<compile_context>
chip_gen: v7x
topology: tpu7x:2x2x1
jax: 0.10.0
libtpu: 0.0.40
codegen_flags: <defaults>
</compile_context>

<pallas_src>
import functools

import jax
import jax.numpy as jnp
from jax.experimental import pallas as pl
from jax.experimental.pallas import tpu as pltpu


# ----------------------------------------------------------------------------
# Fused kernel: 2-layer LSTM -> mean -> GCNConv x2 -> concat-MLP head.
# Single ungridded invocation; all operands are tiny and fully VMEM-resident.
# All sizes are derived statically from the Ref shapes.
# ----------------------------------------------------------------------------
def mynet_kernel(a_ref, x_ref, lstm_tm_ref, lstm_w_ref, gcn_w_ref, mlp_w_ref,
                 out_ref):
    N = x_ref.shape[0]                      # nodes (== LSTM batch)
    F = x_ref.shape[1] - 2                  # GCN input features
    I = lstm_tm_ref.shape[1]                # LSTM input size
    T = lstm_tm_ref.shape[0] // N           # sequence length
    H = lstm_w_ref.shape[1] // 4            # LSTM hidden size
    C = gcn_w_ref.shape[1]                  # GCN hidden channels

    # ---------------- stage 1: 2-layer LSTM (batch_first), last time step ----
    # LSTM parameter slab rows: [W_ih0 | W_hh0 | W_ih1 ; W_hh1 (stacked) | b0 | b1]
    wih0 = lstm_w_ref[0:I, :]                               # [I, 4H]
    whh0 = lstm_w_ref[I:I + H, :]                           # [H, 4H]
    w1 = lstm_w_ref[I + H:I + 3 * H, :]                     # [2H, 4H] = [Wih1; Whh1]
    b0 = lstm_w_ref[I + 3 * H:I + 3 * H + 1, :]             # [1, 4H]
    b1 = lstm_w_ref[I + 3 * H + 1:I + 3 * H + 2, :]         # [1, 4H]

    # Hoisted layer-0 input projection: one [T*N, I] x [I, 4H] matmul (+ bias)
    # instead of T tiny in-loop matmuls.
    p0 = jnp.dot(lstm_tm_ref[...], wih0,
                 preferred_element_type=jnp.float32) + b0   # [T*N, 4H]

    def gates(g):
        # Full-width activations, then slice (PyTorch gate order: i, f, g, o).
        sig = jax.nn.sigmoid(g)
        th = jnp.tanh(g)
        return sig[:, 0:H], sig[:, H:2 * H], th[:, 2 * H:3 * H], sig[:, 3 * H:4 * H]

    h0 = jnp.zeros((N, H), jnp.float32)
    c0 = jnp.zeros((N, H), jnp.float32)
    h1 = jnp.zeros((N, H), jnp.float32)
    c1 = jnp.zeros((N, H), jnp.float32)

    # Statically unrolled time loop (T is a small compile-time constant).
    for t in range(T):
        # layer 0: input projection precomputed; only the recurrent matmul here
        g0 = p0[t * N:(t + 1) * N, :] + jnp.dot(
            h0, whh0, preferred_element_type=jnp.float32)
        i0, f0, gg0, o0 = gates(g0)
        c0 = f0 * c0 + i0 * gg0
        h0 = o0 * jnp.tanh(c0)

        # layer 1: fused [x_t | h] against stacked [W_ih1; W_hh1] -> one dot
        xh = jnp.concatenate([h0, h1], axis=1)              # [N, 2H]
        g1 = jnp.dot(xh, w1, preferred_element_type=jnp.float32) + b1
        i1, f1, gg1, o1 = gates(g1)
        c1 = f1 * c1 + i1 * gg1
        h1 = o1 * jnp.tanh(c1)

    # TODO(synk): data_process.process_lstm_output is not defined in the source
    # module; assume it reduces the hidden dim to one scalar per node (mean).
    x_temporal = jnp.mean(h1, axis=1, keepdims=True)         # [N, 1]

    # ---------------- stage 2: GCN convs ------------------------------------
    # GCN parameter slab rows: [Wc1 | Wc2 | bc1 | bc2]
    wc1 = gcn_w_ref[0:F, :]
    wc2 = gcn_w_ref[F:F + C, :]
    bc1 = gcn_w_ref[F + C:F + C + 1, :]
    bc2 = gcn_w_ref[F + C + 1:F + C + 2, :]

    a = a_ref[...]                                           # A_hat [N, N]
    xf = x_ref[:, 2:2 + F]                                   # node features

    # conv1: A_hat @ (X W1) + b1, relu
    h = jnp.dot(xf, wc1, preferred_element_type=jnp.float32)
    h = jnp.dot(a, h, preferred_element_type=jnp.float32) + bc1
    h = jnp.maximum(h, 0.0)

    # conv2: A_hat @ (h W2) + b2, relu
    h = jnp.dot(h, wc2, preferred_element_type=jnp.float32)
    h = jnp.dot(a, h, preferred_element_type=jnp.float32) + bc2
    h = jnp.maximum(h, 0.0)

    # ---------------- stage 3: concat-MLP head -------------------------------
    # MLP slab rows: [Wl1_h | Wl1_t | Wl1_e(2) | bl1 | bl2 | wl3 | bl3 | pad... | Wl2]
    wl1_h = mlp_w_ref[0:C, :]
    wl1_t = mlp_w_ref[C:C + 1, :]
    we0 = mlp_w_ref[C + 1:C + 2, :]
    we1 = mlp_w_ref[C + 2:C + 3, :]
    bl1 = mlp_w_ref[C + 3:C + 4, :]
    bl2 = mlp_w_ref[C + 4:C + 5, :]
    wl3 = mlp_w_ref[C + 5:C + 6, :]
    bl3 = mlp_w_ref[C + 6:C + 7, 0:1]
    wl2_start = ((C + 7 + 7) // 8) * 8                       # 8-aligned start of Wl2
    wl2 = mlp_w_ref[wl2_start:wl2_start + 64, :]

    # relu(cat([h, x_temporal, external])) @ W_lin1 + b_lin1
    #   = relu(h) @ W_h + relu(xt) @ W_t + relu(ext) @ W_e + b  (h already >= 0)
    # External (K=2) and temporal (K=1) blocks as VPU broadcast FMAs.
    xt = jnp.maximum(x_temporal, 0.0)
    ext = jnp.maximum(x_ref[:, 0:2], 0.0)
    m = (jnp.dot(h, wl1_h, preferred_element_type=jnp.float32)
         + xt * wl1_t
         + ext[:, 0:1] * we0
         + ext[:, 1:2] * we1
         + bl1)
    m = jnp.maximum(m, 0.0)

    m = jnp.maximum(
        jnp.dot(m, wl2, preferred_element_type=jnp.float32) + bl2, 0.0)

    # lin3 (64 -> 1) as a VPU mul + lane reduce (wl3 stored as a [1, 64] row).
    out_ref[...] = jnp.sum(m * wl3, axis=1, keepdims=True) + bl3


def mynet_pallas(a_hat, x, lstm_tm, params):
    N = x.shape[0]
    vmem = pl.BlockSpec(memory_space=pltpu.MemorySpace.VMEM)
    args = (a_hat, x, lstm_tm, params["lstm"], params["gcn"], params["mlp"])
    return pl.pallas_call(
        mynet_kernel,
        out_shape=jax.ShapeDtypeStruct((N, 1), jnp.float32),
        in_specs=[vmem] * len(args),
        out_specs=vmem,
    )(*args)


# ----------------------------------------------------------------------------
# Glue: normalized adjacency, packed parameter init, full forward pass.
# ----------------------------------------------------------------------------
def normalized_adjacency(edge_index, num_nodes):
    src, dst = edge_index
    a = jnp.zeros((num_nodes, num_nodes), jnp.float32).at[src, dst].set(1.0)
    a = a + jnp.eye(num_nodes, dtype=jnp.float32)            # add self loops
    deg = a.sum(axis=1)
    dinv = jax.lax.rsqrt(deg)
    return dinv[:, None] * a * dinv[None, :]


def init_params(key, num_features, hidden_channels, input_size, hidden_size):
    """Parameters packed into 3 contiguous slabs (see kernel layout comments)."""
    F, C, I, H = num_features, hidden_channels, input_size, hidden_size
    H4 = 4 * H
    ks = jax.random.split(key, 18)
    n = lambda k, s: 0.1 * jax.random.normal(k, s, jnp.float32)

    # LSTM (transposed layout: gates = x @ W_ih + h @ W_hh + b, b = b_ih + b_hh)
    wih0 = n(ks[0], (I, H4))
    whh0 = n(ks[1], (H, H4))
    b0 = n(ks[2], (1, H4))
    wih1 = n(ks[3], (H, H4))
    whh1 = n(ks[4], (H, H4))
    b1 = n(ks[5], (1, H4))
    lstm_slab = jnp.concatenate([wih0, whh0, wih1, whh1, b0, b1], axis=0)

    # GCN convs (weights stored [in, out])
    wc1 = n(ks[6], (F, C))
    bc1 = n(ks[7], (1, C))
    wc2 = n(ks[8], (C, C))
    bc2 = n(ks[9], (1, C))
    gcn_slab = jnp.concatenate([wc1, wc2, bc1, bc2], axis=0)

    # MLP head; lin1 split into [C | 1 | 2] row blocks (concat equivalence)
    wl1_h = n(ks[10], (C, 64))
    wl1_t = n(ks[11], (1, 64))
    wl1_e = n(ks[12], (2, 64))
    bl1 = n(ks[13], (1, 64))
    wl2 = n(ks[14], (64, 64))
    bl2 = n(ks[15], (1, 64))
    wl3 = n(ks[16], (1, 64))
    bl3 = n(ks[17], (1, 1))

    head = jnp.concatenate(
        [wl1_h, wl1_t, wl1_e, bl1, bl2, wl3,
         jnp.broadcast_to(bl3, (1, 64))], axis=0)            # [C+7, 64]
    pad_rows = (-head.shape[0]) % 8                          # 8-align Wl2 start
    if pad_rows:
        head = jnp.concatenate(
            [head, jnp.zeros((pad_rows, 64), jnp.float32)], axis=0)
    mlp_slab = jnp.concatenate([head, wl2], axis=0)

    return {"lstm": lstm_slab, "gcn": gcn_slab, "mlp": mlp_slab}


@functools.partial(jax.jit, static_argnames=("num_nodes",))
def mynet_forward(params, x, edge_index, lstm_data, num_nodes):
    # x: [N, num_features + 2]; first 2 cols are external data (kept raw,
    # sliced inside the kernel).
    a_hat = normalized_adjacency(edge_index, num_nodes)

    N, T, I = lstm_data.shape
    # Time-major layout so the layer-0 input projection is a single matmul
    # with T*N rows (the transpose of a few-KiB array is noise).
    lstm_tm = jnp.transpose(lstm_data, (1, 0, 2)).reshape(T * N, I)

    return mynet_pallas(a_hat, x, lstm_tm, params)


if __name__ == "__main__":
    # Small, self-consistent shapes
    N = 16               # nodes (== LSTM batch, one sequence per node)
    NUM_FEATURES = 4     # GCN input features (x has NUM_FEATURES + 2 columns)
    HIDDEN_CHANNELS = 8
    T = 8                # sequence length
    INPUT_SIZE = 8       # LSTM input size
    HIDDEN_SIZE = 32     # LSTM hidden size

    key = jax.random.PRNGKey(0)
    k_x, k_lstm, k_p = jax.random.split(key, 3)

    x = jax.random.normal(k_x, (N, NUM_FEATURES + 2), jnp.float32)
    lstm_data = jax.random.normal(k_lstm, (N, T, INPUT_SIZE), jnp.float32)

    # deterministic ring graph (bidirectional)
    idx = jnp.arange(N)
    src = jnp.concatenate([idx, (idx + 1) % N])
    dst = jnp.concatenate([(idx + 1) % N, idx])
    edge_index = jnp.stack([src, dst])  # [2, 2N]

    params = init_params(k_p, NUM_FEATURES, HIDDEN_CHANNELS, INPUT_SIZE, HIDDEN_SIZE)

    out = mynet_forward(params, x, edge_index, lstm_data, num_nodes=N)
    out = jax.block_until_ready(out)
    assert out.shape == (N, 1)
    print("KERNEL_OK")
</pallas_src>

<mosaic_0001>
module attributes {stable_mosaic.version = 11 : i64} {
  func.func @mynet_kernel(%arg0: memref<16x16xf32, #tpu.memory_space<vmem>>, %arg1: memref<16x6xf32, #tpu.memory_space<vmem>>, %arg2: memref<128x8xf32, #tpu.memory_space<vmem>>, %arg3: memref<106x128xf32, #tpu.memory_space<vmem>>, %arg4: memref<14x8xf32, #tpu.memory_space<vmem>>, %arg5: memref<80x64xf32, #tpu.memory_space<vmem>>, %arg6: memref<16x1xf32, #tpu.memory_space<vmem>>) attributes {dimension_semantics = [], scalar_prefetch = 0 : i64, scratch_operands = 0 : i64, tpu.core_type = #tpu.core_type<tc>} {
    %c0 = arith.constant 0 : index
    %c0_0 = arith.constant 0 : index
    %0 = vector.load %arg3[%c0, %c0_0] : memref<106x128xf32, #tpu.memory_space<vmem>>, vector<8x128xf32>
    %c8 = arith.constant 8 : index
    %c0_1 = arith.constant 0 : index
    %1 = vector.load %arg3[%c8, %c0_1] : memref<106x128xf32, #tpu.memory_space<vmem>>, vector<32x128xf32>
    %c40 = arith.constant 40 : index
    %c0_2 = arith.constant 0 : index
    %2 = vector.load %arg3[%c40, %c0_2] : memref<106x128xf32, #tpu.memory_space<vmem>>, vector<64x128xf32>
    %c104 = arith.constant 104 : index
    %c0_3 = arith.constant 0 : index
    %3 = vector.load %arg3[%c104, %c0_3] : memref<106x128xf32, #tpu.memory_space<vmem>>, vector<1x128xf32>
    %c105 = arith.constant 105 : index
    %c0_4 = arith.constant 0 : index
    %4 = vector.load %arg3[%c105, %c0_4] : memref<106x128xf32, #tpu.memory_space<vmem>>, vector<1x128xf32>
    %c0_5 = arith.constant 0 : index
    %c0_6 = arith.constant 0 : index
    %5 = vector.load %arg2[%c0_5, %c0_6] : memref<128x8xf32, #tpu.memory_space<vmem>>, vector<128x8xf32>
    %cst = arith.constant dense<0.000000e+00> : vector<128x128xf32>
    %6 = tpu.matmul %5, %0, %cst {dimension_numbers = #tpu.dot_dimension_numbers<[1], [0], [0], [1], [0, 0, 1, 1], [], []>} : vector<128x8xf32>, vector<8x128xf32>, vector<128x128xf32> -> vector<128x128xf32>
    %7 = vector.broadcast %3 : vector<1x128xf32> to vector<128x128xf32>
    %8 = arith.addf %6, %7 : vector<128x128xf32>
    %cst_7 = arith.constant 0.000000e+00 : f32
    %9 = vector.broadcast %cst_7 : f32 to vector<16x32xf32>
    %cst_8 = arith.constant 0.000000e+00 : f32
    %10 = vector.broadcast %cst_8 : f32 to vector<16x32xf32>
    %cst_9 = arith.constant 0.000000e+00 : f32
    %11 = vector.broadcast %cst_9 : f32 to vector<16x32xf32>
    %cst_10 = arith.constant 0.000000e+00 : f32
    %12 = vector.broadcast %cst_10 : f32 to vector<16x32xf32>
    %13 = vector.extract_strided_slice %8 {offsets = [0, 0], sizes = [16, 128], strides = [1, 1]} : vector<128x128xf32> to vector<16x128xf32>
    %cst_11 = arith.constant dense<0.000000e+00> : vector<16x128xf32>
    %14 = tpu.matmul %9, %1, %cst_11 {dimension_numbers = #tpu.dot_dimension_numbers<[1], [0], [0], [1], [0, 0, 1, 1], [], []>} : vector<16x32xf32>, vector<32x128xf32>, vector<16x128xf32> -> vector<16x128xf32>
    %15 = arith.addf %13, %14 : vector<16x128xf32>
    %16 = arith.negf %15 : vector<16x128xf32>
    %17 = math.exp %16 : vector<16x128xf32>
    %cst_12 = arith.constant 1.000000e+00 : f32
    %18 = vector.broadcast %cst_12 : f32 to vector<16x128xf32>
    %19 = arith.addf %18, %17 : vector<16x128xf32>
    %20 = arith.divf %18, %19 : vector<16x128xf32>
    %21 = math.tanh %15 : vector<16x128xf32>
    %22 = vector.extract_strided_slice %20 {offsets = [0, 0], sizes = [16, 32], strides = [1, 1]} : vector<16x128xf32> to vector<16x32xf32>
    %23 = vector.extract_strided_slice %20 {offsets = [0, 32], sizes = [16, 32], strides = [1, 1]} : vector<16x128xf32> to vector<16x32xf32>
    %24 = vector.extract_strided_slice %21 {offsets = [0, 64], sizes = [16, 32], strides = [1, 1]} : vector<16x128xf32> to vector<16x32xf32>
    %25 = vector.extract_strided_slice %20 {offsets = [0, 96], sizes = [16, 32], strides = [1, 1]} : vector<16x128xf32> to vector<16x32xf32>
    %26 = arith.mulf %23, %10 : vector<16x32xf32>
    %27 = arith.mulf %22, %24 : vector<16x32xf32>
    %28 = arith.addf %26, %27 : vector<16x32xf32>
    %29 = math.tanh %28 : vector<16x32xf32>
    %30 = arith.mulf %25, %29 : vector<16x32xf32>
    %31 = tpu.concatenate %30, %11 in 1 : vector<16x32xf32>, vector<16x32xf32> -> vector<16x64xf32>
    %cst_13 = arith.constant dense<0.000000e+00> : vector<16x128xf32>
    %32 = tpu.matmul %31, %2, %cst_13 {dimension_numbers = #tpu.dot_dimension_numbers<[1], [0], [0], [1], [0, 0, 1, 1], [], []>} : vector<16x64xf32>, vector<64x128xf32>, vector<16x128xf32> -> vector<16x128xf32>
    %33 = vector.broadcast %4 : vector<1x128xf32> to vector<16x128xf32>
    %34 = arith.addf %32, %33 : vector<16x128xf32>
    %35 = arith.negf %34 : vector<16x128xf32>
    %36 = math.exp %35 : vector<16x128xf32>
    %cst_14 = arith.constant 1.000000e+00 : f32
    %37 = vector.broadcast %cst_14 : f32 to vector<16x128xf32>
    %38 = arith.addf %37, %36 : vector<16x128xf32>
    %39 = arith.divf %37, %38 : vector<16x128xf32>
    %40 = math.tanh %34 : vector<16x128xf32>
    %41 = vector.extract_strided_slice %39 {offsets = [0, 0], sizes = [16, 32], strides = [1, 1]} : vector<16x128xf32> to vector<16x32xf32>
    %42 = vector.extract_strided_slice %39 {offsets = [0, 32], sizes = [16, 32], strides = [1, 1]} : vector<16x128xf32> to vector<16x32xf32>
    %43 = vector.extract_strided_slice %40 {offsets = [0, 64], sizes = [16, 32], strides = [1, 1]} : vector<16x128xf32> to vector<16x32xf32>
    %44 = vector.extract_strided_slice %39 {offsets = [0, 96], sizes = [16, 32], strides = [1, 1]} : vector<16x128xf32> to vector<16x32xf32>
    %45 = arith.mulf %42, %12 : vector<16x32xf32>
    %46 = arith.mulf %41, %43 : vector<16x32xf32>
    %47 = arith.addf %45, %46 : vector<16x32xf32>
    %48 = math.tanh %47 : vector<16x32xf32>
    %49 = arith.mulf %44, %48 : vector<16x32xf32>
    %50 = vector.extract_strided_slice %8 {offsets = [16, 0], sizes = [16, 128], strides = [1, 1]} : vector<128x128xf32> to vector<16x128xf32>
    %cst_15 = arith.constant dense<0.000000e+00> : vector<16x128xf32>
    %51 = tpu.matmul %30, %1, %cst_15 {dimension_numbers = #tpu.dot_dimension_numbers<[1], [0], [0], [1], [0, 0, 1, 1], [], []>} : vector<16x32xf32>, vector<32x128xf32>, vector<16x128xf32> -> vector<16x128xf32>
    %52 = arith.addf %50, %51 : vector<16x128xf32>
    %53 = arith.negf %52 : vector<16x128xf32>
    %54 = math.exp %53 : vector<16x128xf32>
    %cst_16 = arith.constant 1.000000e+00 : f32
    %55 = vector.broadcast %cst_16 : f32 to vector<16x128xf32>
    %56 = arith.addf %55, %54 : vector<16x128xf32>
    %57 = arith.divf %55, %56 : vector<16x128xf32>
    %58 = math.tanh %52 : vector<16x128xf32>
    %59 = vector.extract_strided_slice %57 {offsets = [0, 0], sizes = [16, 32], strides = [1, 1]} : vector<16x128xf32> to vector<16x32xf32>
    %60 = vector.extract_strided_slice %57 {offsets = [0, 32], sizes = [16, 32], strides = [1, 1]} : vector<16x128xf32> to vector<16x32xf32>
    %61 = vector.extract_strided_slice %58 {offsets = [0, 64], sizes = [16, 32], strides = [1, 1]} : vector<16x128xf32> to vector<16x32xf32>
    %62 = vector.extract_strided_slice %57 {offsets = [0, 96], sizes = [16, 32], strides = [1, 1]} : vector<16x128xf32> to vector<16x32xf32>
    %63 = arith.mulf %60, %28 : vector<16x32xf32>
    %64 = arith.mulf %59, %61 : vector<16x32xf32>
    %65 = arith.addf %63, %64 : vector<16x32xf32>
    %66 = math.tanh %65 : vector<16x32xf32>
    %67 = arith.mulf %62, %66 : vector<16x32xf32>
    %68 = tpu.concatenate %67, %49 in 1 : vector<16x32xf32>, vector<16x32xf32> -> vector<16x64xf32>
    %cst_17 = arith.constant dense<0.000000e+00> : vector<16x128xf32>
    %69 = tpu.matmul %68, %2, %cst_17 {dimension_numbers = #tpu.dot_dimension_numbers<[1], [0], [0], [1], [0, 0, 1, 1], [], []>} : vector<16x64xf32>, vector<64x128xf32>, vector<16x128xf32> -> vector<16x128xf32>
    %70 = vector.broadcast %4 : vector<1x128xf32> to vector<16x128xf32>
    %71 = arith.addf %69, %70 : vector<16x128xf32>
    %72 = arith.negf %71 : vector<16x128xf32>
    %73 = math.exp %72 : vector<16x128xf32>
    %cst_18 = arith.constant 1.000000e+00 : f32
    %74 = vector.broadcast %cst_18 : f32 to vector<16x128xf32>
    %75 = arith.addf %74, %73 : vector<16x128xf32>
    %76 = arith.divf %74, %75 : vector<16x128xf32>
    %77 = math.tanh %71 : vector<16x128xf32>
    %78 = vector.extract_strided_slice %76 {offsets = [0, 0], sizes = [16, 32], strides = [1, 1]} : vector<16x128xf32> to vector<16x32xf32>
    %79 = vector.extract_strided_slice %76 {offsets = [0, 32], sizes = [16, 32], strides = [1, 1]} : vector<16x128xf32> to vector<16x32xf32>
    %80 = vector.extract_strided_slice %77 {offsets = [0, 64], sizes = [16, 32], strides = [1, 1]} : vector<16x128xf32> to vector<16x32xf32>
    %81 = vector.extract_strided_slice %76 {offsets = [0, 96], sizes = [16, 32], strides = [1, 1]} : vector<16x128xf32> to vector<16x32xf32>
    %82 = arith.mulf %79, %47 : vector<16x32xf32>
    %83 = arith.mulf %78, %80 : vector<16x32xf32>
    %84 = arith.addf %82, %83 : vector<16x32xf32>
    %85 = math.tanh %84 : vector<16x32xf32>
    %86 = arith.mulf %81, %85 : vector<16x32xf32>
    %87 = vector.extract_strided_slice %8 {offsets = [32, 0], sizes = [16, 128], strides = [1, 1]} : vector<128x128xf32> to vector<16x128xf32>
    %cst_19 = arith.constant dense<0.000000e+00> : vector<16x128xf32>
    %88 = tpu.matmul %67, %1, %cst_19 {dimension_numbers = #tpu.dot_dimension_numbers<[1], [0], [0], [1], [0, 0, 1, 1], [], []>} : vector<16x32xf32>, vector<32x128xf32>, vector<16x128xf32> -> vector<16x128xf32>
    %89 = arith.addf %87, %88 : vector<16x128xf32>
    %90 = arith.negf %89 : vector<16x128xf32>
    %91 = math.exp %90 : vector<16x128xf32>
    %cst_20 = arith.constant 1.000000e+00 : f32
    %92 = vector.broadcast %cst_20 : f32 to vector<16x128xf32>
    %93 = arith.addf %92, %91 : vector<16x128xf32>
    %94 = arith.divf %92, %93 : vector<16x128xf32>
    %95 = math.tanh %89 : vector<16x128xf32>
    %96 = vector.extract_strided_slice %94 {offsets = [0, 0], sizes = [16, 32], strides = [1, 1]} : vector<16x128xf32> to vector<16x32xf32>
    %97 = vector.extract_strided_slice %94 {offsets = [0, 32], sizes = [16, 32], strides = [1, 1]} : vector<16x128xf32> to vector<16x32xf32>
    %98 = vector.extract_strided_slice %95 {offsets = [0, 64], sizes = [16, 32], strides = [1, 1]} : vector<16x128xf32> to vector<16x32xf32>
    %99 = vector.extract_strided_slice %94 {offsets = [0, 96], sizes = [16, 32], strides = [1, 1]} : vector<16x128xf32> to vector<16x32xf32>
    %100 = arith.mulf %97, %65 : vector<16x32xf32>
    %101 = arith.mulf %96, %98 : vector<16x32xf32>
    %102 = arith.addf %100, %101 : vector<16x32xf32>
    %103 = math.tanh %102 : vector<16x32xf32>
    %104 = arith.mulf %99, %103 : vector<16x32xf32>
    %105 = tpu.concatenate %104, %86 in 1 : vector<16x32xf32>, vector<16x32xf32> -> vector<16x64xf32>
    %cst_21 = arith.constant dense<0.000000e+00> : vector<16x128xf32>
    %106 = tpu.matmul %105, %2, %cst_21 {dimension_numbers = #tpu.dot_dimension_numbers<[1], [0], [0], [1], [0, 0, 1, 1], [], []>} : vector<16x64xf32>, vector<64x128xf32>, vector<16x128xf32> -> vector<16x128xf32>
    %107 = vector.broadcast %4 : vector<1x128xf32> to vector<16x128xf32>
    %108 = arith.addf %106, %107 : vector<16x128xf32>
    %109 = arith.negf %108 : vector<16x128xf32>
    %110 = math.exp %109 : vector<16x128xf32>
    %cst_22 = arith.constant 1.000000e+00 : f32
    %111 = vector.broadcast %cst_22 : f32 to vector<16x128xf32>
    %112 = arith.addf %111, %110 : vector<16x128xf32>
    %113 = arith.divf %111, %112 : vector<16x128xf32>
    %114 = math.tanh %108 : vector<16x128xf32>
    %115 = vector.extract_strided_slice %113 {offsets = [0, 0], sizes = [16, 32], strides = [1, 1]} : vector<16x128xf32> to vector<16x32xf32>
    %116 = vector.extract_strided_slice %113 {offsets = [0, 32], sizes = [16, 32], strides = [1, 1]} : vector<16x128xf32> to vector<16x32xf32>
    %117 = vector.extract_strided_slice %114 {offsets = [0, 64], sizes = [16, 32], strides = [1, 1]} : vector<16x128xf32> to vector<16x32xf32>
    %118 = vector.extract_strided_slice %113 {offsets = [0, 96], sizes = [16, 32], strides = [1, 1]} : vector<16x128xf32> to vector<16x32xf32>
    %119 = arith.mulf %116, %84 : vector<16x32xf32>
    %120 = arith.mulf %115, %117 : vector<16x32xf32>
    %121 = arith.addf %119, %120 : vector<16x32xf32>
    %122 = math.tanh %121 : vector<16x32xf32>
    %123 = arith.mulf %118, %122 : vector<16x32xf32>
    %124 = vector.extract_strided_slice %8 {offsets = [48, 0], sizes = [16, 128], strides = [1, 1]} : vector<128x128xf32> to vector<16x128xf32>
    %cst_23 = arith.constant dense<0.000000e+00> : vector<16x128xf32>
    %125 = tpu.matmul %104, %1, %cst_23 {dimension_numbers = #tpu.dot_dimension_numbers<[1], [0], [0], [1], [0, 0, 1, 1], [], []>} : vector<16x32xf32>, vector<32x128xf32>, vector<16x128xf32> -> vector<16x128xf32>
    %126 = arith.addf %124, %125 : vector<16x128xf32>
    %127 = arith.negf %126 : vector<16x128xf32>
    %128 = math.exp %127 : vector<16x128xf32>
    %cst_24 = arith.constant 1.000000e+00 : f32
    %129 = vector.broadcast %cst_24 : f32 to vector<16x128xf32>
    %130 = arith.addf %129, %128 : vector<16x128xf32>
    %131 = arith.divf %129, %130 : vector<16x128xf32>
    %132 = math.tanh %126 : vector<16x128xf32>
    %133 = vector.extract_strided_slice %131 {offsets = [0, 0], sizes = [16, 32], strides = [1, 1]} : vector<16x128xf32> to vector<16x32xf32>
    %134 = vector.extract_strided_slice %131 {offsets = [0, 32], sizes = [16, 32], strides = [1, 1]} : vector<16x128xf32> to vector<16x32xf32>
    %135 = vector.extract_strided_slice %132 {offsets = [0, 64], sizes = [16, 32], strides = [1, 1]} : vector<16x128xf32> to vector<16x32xf32>
    %136 = vector.extract_strided_slice %131 {offsets = [0, 96], sizes = [16, 32], strides = [1, 1]} : vector<16x128xf32> to vector<16x32xf32>
    %137 = arith.mulf %134, %102 : vector<16x32xf32>
    %138 = arith.mulf %133, %135 : vector<16x32xf32>
    %139 = arith.addf %137, %138 : vector<16x32xf32>
    %140 = math.tanh %139 : vector<16x32xf32>
    %141 = arith.mulf %136, %140 : vector<16x32xf32>
    %142 = tpu.concatenate %141, %123 in 1 : vector<16x32xf32>, vector<16x32xf32> -> vector<16x64xf32>
    %cst_25 = arith.constant dense<0.000000e+00> : vector<16x128xf32>
    %143 = tpu.matmul %142, %2, %cst_25 {dimension_numbers = #tpu.dot_dimension_numbers<[1], [0], [0], [1], [0, 0, 1, 1], [], []>} : vector<16x64xf32>, vector<64x128xf32>, vector<16x128xf32> -> vector<16x128xf32>
    %144 = vector.broadcast %4 : vector<1x128xf32> to vector<16x128xf32>
    %145 = arith.addf %143, %144 : vector<16x128xf32>
    %146 = arith.negf %145 : vector<16x128xf32>
    %147 = math.exp %146 : vector<16x128xf32>
    %cst_26 = arith.constant 1.000000e+00 : f32
    %148 = vector.broadcast %cst_26 : f32 to vector<16x128xf32>
    %149 = arith.addf %148, %147 : vector<16x128xf32>
    %150 = arith.divf %148, %149 : vector<16x128xf32>
    %151 = math.tanh %145 : vector<16x128xf32>
    %152 = vector.extract_strided_slice %150 {offsets = [0, 0], sizes = [16, 32], strides = [1, 1]} : vector<16x128xf32> to vector<16x32xf32>
    %153 = vector.extract_strided_slice %150 {offsets = [0, 32], sizes = [16, 32], strides = [1, 1]} : vector<16x128xf32> to vector<16x32xf32>
    %154 = vector.extract_strided_slice %151 {offsets = [0, 64], sizes = [16, 32], strides = [1, 1]} : vector<16x128xf32> to vector<16x32xf32>
    %155 = vector.extract_strided_slice %150 {offsets = [0, 96], sizes = [16, 32], strides = [1, 1]} : vector<16x128xf32> to vector<16x32xf32>
    %156 = arith.mulf %153, %121 : vector<16x32xf32>
    %157 = arith.mulf %152, %154 : vector<16x32xf32>
    %158 = arith.addf %156, %157 : vector<16x32xf32>
    %159 = math.tanh %158 : vector<16x32xf32>
    %160 = arith.mulf %155, %159 : vector<16x32xf32>
    %161 = vector.extract_strided_slice %8 {offsets = [64, 0], sizes = [16, 128], strides = [1, 1]} : vector<128x128xf32> to vector<16x128xf32>
    %cst_27 = arith.constant dense<0.000000e+00> : vector<16x128xf32>
    %162 = tpu.matmul %141, %1, %cst_27 {dimension_numbers = #tpu.dot_dimension_numbers<[1], [0], [0], [1], [0, 0, 1, 1], [], []>} : vector<16x32xf32>, vector<32x128xf32>, vector<16x128xf32> -> vector<16x128xf32>
    %163 = arith.addf %161, %162 : vector<16x128xf32>
    %164 = arith.negf %163 : vector<16x128xf32>
    %165 = math.exp %164 : vector<16x128xf32>
    %cst_28 = arith.constant 1.000000e+00 : f32
    %166 = vector.broadcast %cst_28 : f32 to vector<16x128xf32>
    %167 = arith.addf %166, %165 : vector<16x128xf32>
    %168 = arith.divf %166, %167 : vector<16x128xf32>
    %169 = math.tanh %163 : vector<16x128xf32>
    %170 = vector.extract_strided_slice %168 {offsets = [0, 0], sizes = [16, 32], strides = [1, 1]} : vector<16x128xf32> to vector<16x32xf32>
    %171 = vector.extract_strided_slice %168 {offsets = [0, 32], sizes = [16, 32], strides = [1, 1]} : vector<16x128xf32> to vector<16x32xf32>
    %172 = vector.extract_strided_slice %169 {offsets = [0, 64], sizes = [16, 32], strides = [1, 1]} : vector<16x128xf32> to vector<16x32xf32>
    %173 = vector.extract_strided_slice %168 {offsets = [0, 96], sizes = [16, 32], strides = [1, 1]} : vector<16x128xf32> to vector<16x32xf32>
    %174 = arith.mulf %171, %139 : vector<16x32xf32>
    %175 = arith.mulf %170, %172 : vector<16x32xf32>
    %176 = arith.addf %174, %175 : vector<16x32xf32>
    %177 = math.tanh %176 : vector<16x32xf32>
    %178 = arith.mulf %173, %177 : vector<16x32xf32>
    %179 = tpu.concatenate %178, %160 in 1 : vector<16x32xf32>, vector<16x32xf32> -> vector<16x64xf32>
    %cst_29 = arith.constant dense<0.000000e+00> : vector<16x128xf32>
    %180 = tpu.matmul %179, %2, %cst_29 {dimension_numbers = #tpu.dot_dimension_numbers<[1], [0], [0], [1], [0, 0, 1, 1], [], []>} : vector<16x64xf32>, vector<64x128xf32>, vector<16x128xf32> -> vector<16x128xf32>
    %181 = vector.broadcast %4 : vector<1x128xf32> to vector<16x128xf32>
    %182 = arith.addf %180, %181 : vector<16x128xf32>
    %183 = arith.negf %182 : vector<16x128xf32>
    %184 = math.exp %183 : vector<16x128xf32>
    %cst_30 = arith.constant 1.000000e+00 : f32
    %185 = vector.broadcast %cst_30 : f32 to vector<16x128xf32>
    %186 = arith.addf %185, %184 : vector<16x128xf32>
    %187 = arith.divf %185, %186 : vector<16x128xf32>
    %188 = math.tanh %182 : vector<16x128xf32>
    %189 = vector.extract_strided_slice %187 {offsets = [0, 0], sizes = [16, 32], strides = [1, 1]} : vector<16x128xf32> to vector<16x32xf32>
    %190 = vector.extract_strided_slice %187 {offsets = [0, 32], sizes = [16, 32], strides = [1, 1]} : vector<16x128xf32> to vector<16x32xf32>
    %191 = vector.extract_strided_slice %188 {offsets = [0, 64], sizes = [16, 32], strides = [1, 1]} : vector<16x128xf32> to vector<16x32xf32>
    %192 = vector.extract_strided_slice %187 {offsets = [0, 96], sizes = [16, 32], strides = [1, 1]} : vector<16x128xf32> to vector<16x32xf32>
    %193 = arith.mulf %190, %158 : vector<16x32xf32>
    %194 = arith.mulf %189, %191 : vector<16x32xf32>
    %195 = arith.addf %193, %194 : vector<16x32xf32>
    %196 = math.tanh %195 : vector<16x32xf32>
    %197 = arith.mulf %192, %196 : vector<16x32xf32>
    %198 = vector.extract_strided_slice %8 {offsets = [80, 0], sizes = [16, 128], strides = [1, 1]} : vector<128x128xf32> to vector<16x128xf32>
    %cst_31 = arith.constant dense<0.000000e+00> : vector<16x128xf32>
    %199 = tpu.matmul %178, %1, %cst_31 {dimension_numbers = #tpu.dot_dimension_numbers<[1], [0], [0], [1], [0, 0, 1, 1], [], []>} : vector<16x32xf32>, vector<32x128xf32>, vector<16x128xf32> -> vector<16x128xf32>
    %200 = arith.addf %198, %199 : vector<16x128xf32>
    %201 = arith.negf %200 : vector<16x128xf32>
    %202 = math.exp %201 : vector<16x128xf32>
    %cst_32 = arith.constant 1.000000e+00 : f32
    %203 = vector.broadcast %cst_32 : f32 to vector<16x128xf32>
    %204 = arith.addf %203, %202 : vector<16x128xf32>
    %205 = arith.divf %203, %204 : vector<16x128xf32>
    %206 = math.tanh %200 : vector<16x128xf32>
    %207 = vector.extract_strided_slice %205 {offsets = [0, 0], sizes = [16, 32], strides = [1, 1]} : vector<16x128xf32> to vector<16x32xf32>
    %208 = vector.extract_strided_slice %205 {offsets = [0, 32], sizes = [16, 32], strides = [1, 1]} : vector<16x128xf32> to vector<16x32xf32>
    %209 = vector.extract_strided_slice %206 {offsets = [0, 64], sizes = [16, 32], strides = [1, 1]} : vector<16x128xf32> to vector<16x32xf32>
    %210 = vector.extract_strided_slice %205 {offsets = [0, 96], sizes = [16, 32], strides = [1, 1]} : vector<16x128xf32> to vector<16x32xf32>
    %211 = arith.mulf %208, %176 : vector<16x32xf32>
    %212 = arith.mulf %207, %209 : vector<16x32xf32>
    %213 = arith.addf %211, %212 : vector<16x32xf32>
    %214 = math.tanh %213 : vector<16x32xf32>
    %215 = arith.mulf %210, %214 : vector<16x32xf32>
    %216 = tpu.concatenate %215, %197 in 1 : vector<16x32xf32>, vector<16x32xf32> -> vector<16x64xf32>
    %cst_33 = arith.constant dense<0.000000e+00> : vector<16x128xf32>
    %217 = tpu.matmul %216, %2, %cst_33 {dimension_numbers = #tpu.dot_dimension_numbers<[1], [0], [0], [1], [0, 0, 1, 1], [], []>} : vector<16x64xf32>, vector<64x128xf32>, vector<16x128xf32> -> vector<16x128xf32>
    %218 = vector.broadcast %4 : vector<1x128xf32> to vector<16x128xf32>
    %219 = arith.addf %217, %218 : vector<16x128xf32>
    %220 = arith.negf %219 : vector<16x128xf32>
    %221 = math.exp %220 : vector<16x128xf32>
    %cst_34 = arith.constant 1.000000e+00 : f32
    %222 = vector.broadcast %cst_34 : f32 to vector<16x128xf32>
    %223 = arith.addf %222, %221 : vector<16x128xf32>
    %224 = arith.divf %222, %223 : vector<16x128xf32>
    %225 = math.tanh %219 : vector<16x128xf32>
    %226 = vector.extract_strided_slice %224 {offsets = [0, 0], sizes = [16, 32], strides = [1, 1]} : vector<16x128xf32> to vector<16x32xf32>
    %227 = vector.extract_strided_slice %224 {offsets = [0, 32], sizes = [16, 32], strides = [1, 1]} : vector<16x128xf32> to vector<16x32xf32>
    %228 = vector.extract_strided_slice %225 {offsets = [0, 64], sizes = [16, 32], strides = [1, 1]} : vector<16x128xf32> to vector<16x32xf32>
    %229 = vector.extract_strided_slice %224 {offsets = [0, 96], sizes = [16, 32], strides = [1, 1]} : vector<16x128xf32> to vector<16x32xf32>
    %230 = arith.mulf %227, %195 : vector<16x32xf32>
    %231 = arith.mulf %226, %228 : vector<16x32xf32>
    %232 = arith.addf %230, %231 : vector<16x32xf32>
    %233 = math.tanh %232 : vector<16x32xf32>
    %234 = arith.mulf %229, %233 : vector<16x32xf32>
    %235 = vector.extract_strided_slice %8 {offsets = [96, 0], sizes = [16, 128], strides = [1, 1]} : vector<128x128xf32> to vector<16x128xf32>
    %cst_35 = arith.constant dense<0.000000e+00> : vector<16x128xf32>
    %236 = tpu.matmul %215, %1, %cst_35 {dimension_numbers = #tpu.dot_dimension_numbers<[1], [0], [0], [1], [0, 0, 1, 1], [], []>} : vector<16x32xf32>, vector<32x128xf32>, vector<16x128xf32> -> vector<16x128xf32>
    %237 = arith.addf %235, %236 : vector<16x128xf32>
    %238 = arith.negf %237 : vector<16x128xf32>
    %239 = math.exp %238 : vector<16x128xf32>
    %cst_36 = arith.constant 1.000000e+00 : f32
    %240 = vector.broadcast %cst_36 : f32 to vector<16x128xf32>
    %241 = arith.addf %240, %239 : vector<16x128xf32>
    %242 = arith.divf %240, %241 : vector<16x128xf32>
    %243 = math.tanh %237 : vector<16x128xf32>
    %244 = vector.extract_strided_slice %242 {offsets = [0, 0], sizes = [16, 32], strides = [1, 1]} : vector<16x128xf32> to vector<16x32xf32>
    %245 = vector.extract_strided_slice %242 {offsets = [0, 32], sizes = [16, 32], strides = [1, 1]} : vector<16x128xf32> to vector<16x32xf32>
    %246 = vector.extract_strided_slice %243 {offsets = [0, 64], sizes = [16, 32], strides = [1, 1]} : vector<16x128xf32> to vector<16x32xf32>
    %247 = vector.extract_strided_slice %242 {offsets = [0, 96], sizes = [16, 32], strides = [1, 1]} : vector<16x128xf32> to vector<16x32xf32>
    %248 = arith.mulf %245, %213 : vector<16x32xf32>
    %249 = arith.mulf %244, %246 : vector<16x32xf32>
    %250 = arith.addf %248, %249 : vector<16x32xf32>
    %251 = math.tanh %250 : vector<16x32xf32>
    %252 = arith.mulf %247, %251 : vector<16x32xf32>
    %253 = tpu.concatenate %252, %234 in 1 : vector<16x32xf32>, vector<16x32xf32> -> vector<16x64xf32>
    %cst_37 = arith.constant dense<0.000000e+00> : vector<16x128xf32>
    %254 = tpu.matmul %253, %2, %cst_37 {dimension_numbers = #tpu.dot_dimension_numbers<[1], [0], [0], [1], [0, 0, 1, 1], [], []>} : vector<16x64xf32>, vector<64x128xf32>, vector<16x128xf32> -> vector<16x128xf32>
    %255 = vector.broadcast %4 : vector<1x128xf32> to vector<16x128xf32>
    %256 = arith.addf %254, %255 : vector<16x128xf32>
    %257 = arith.negf %256 : vector<16x128xf32>
    %258 = math.exp %257 : vector<16x128xf32>
    %cst_38 = arith.constant 1.000000e+00 : f32
    %259 = vector.broadcast %cst_38 : f32 to vector<16x128xf32>
    %260 = arith.addf %259, %258 : vector<16x128xf32>
    %261 = arith.divf %259, %260 : vector<16x128xf32>
    %262 = math.tanh %256 : vector<16x128xf32>
    %263 = vector.extract_strided_slice %261 {offsets = [0, 0], sizes = [16, 32], strides = [1, 1]} : vector<16x128xf32> to vector<16x32xf32>
    %264 = vector.extract_strided_slice %261 {offsets = [0, 32], sizes = [16, 32], strides = [1, 1]} : vector<16x128xf32> to vector<16x32xf32>
    %265 = vector.extract_strided_slice %262 {offsets = [0, 64], sizes = [16, 32], strides = [1, 1]} : vector<16x128xf32> to vector<16x32xf32>
    %266 = vector.extract_strided_slice %261 {offsets = [0, 96], sizes = [16, 32], strides = [1, 1]} : vector<16x128xf32> to vector<16x32xf32>
    %267 = arith.mulf %264, %232 : vector<16x32xf32>
    %268 = arith.mulf %263, %265 : vector<16x32xf32>
    %269 = arith.addf %267, %268 : vector<16x32xf32>
    %270 = math.tanh %269 : vector<16x32xf32>
    %271 = arith.mulf %266, %270 : vector<16x32xf32>
    %272 = vector.extract_strided_slice %8 {offsets = [112, 0], sizes = [16, 128], strides = [1, 1]} : vector<128x128xf32> to vector<16x128xf32>
    %cst_39 = arith.constant dense<0.000000e+00> : vector<16x128xf32>
    %273 = tpu.matmul %252, %1, %cst_39 {dimension_numbers = #tpu.dot_dimension_numbers<[1], [0], [0], [1], [0, 0, 1, 1], [], []>} : vector<16x32xf32>, vector<32x128xf32>, vector<16x128xf32> -> vector<16x128xf32>
    %274 = arith.addf %272, %273 : vector<16x128xf32>
    %275 = arith.negf %274 : vector<16x128xf32>
    %276 = math.exp %275 : vector<16x128xf32>
    %cst_40 = arith.constant 1.000000e+00 : f32
    %277 = vector.broadcast %cst_40 : f32 to vector<16x128xf32>
    %278 = arith.addf %277, %276 : vector<16x128xf32>
    %279 = arith.divf %277, %278 : vector<16x128xf32>
    %280 = math.tanh %274 : vector<16x128xf32>
    %281 = vector.extract_strided_slice %279 {offsets = [0, 0], sizes = [16, 32], strides = [1, 1]} : vector<16x128xf32> to vector<16x32xf32>
    %282 = vector.extract_strided_slice %279 {offsets = [0, 32], sizes = [16, 32], strides = [1, 1]} : vector<16x128xf32> to vector<16x32xf32>
    %283 = vector.extract_strided_slice %280 {offsets = [0, 64], sizes = [16, 32], strides = [1, 1]} : vector<16x128xf32> to vector<16x32xf32>
    %284 = vector.extract_strided_slice %279 {offsets = [0, 96], sizes = [16, 32], strides = [1, 1]} : vector<16x128xf32> to vector<16x32xf32>
    %285 = arith.mulf %282, %250 : vector<16x32xf32>
    %286 = arith.mulf %281, %283 : vector<16x32xf32>
    %287 = arith.addf %285, %286 : vector<16x32xf32>
    %288 = math.tanh %287 : vector<16x32xf32>
    %289 = arith.mulf %284, %288 : vector<16x32xf32>
    %290 = tpu.concatenate %289, %271 in 1 : vector<16x32xf32>, vector<16x32xf32> -> vector<16x64xf32>
    %cst_41 = arith.constant dense<0.000000e+00> : vector<16x128xf32>
    %291 = tpu.matmul %290, %2, %cst_41 {dimension_numbers = #tpu.dot_dimension_numbers<[1], [0], [0], [1], [0, 0, 1, 1], [], []>} : vector<16x64xf32>, vector<64x128xf32>, vector<16x128xf32> -> vector<16x128xf32>
    %292 = vector.broadcast %4 : vector<1x128xf32> to vector<16x128xf32>
    %293 = arith.addf %291, %292 : vector<16x128xf32>
    %294 = arith.negf %293 : vector<16x128xf32>
    %295 = math.exp %294 : vector<16x128xf32>
    %cst_42 = arith.constant 1.000000e+00 : f32
    %296 = vector.broadcast %cst_42 : f32 to vector<16x128xf32>
    %297 = arith.addf %296, %295 : vector<16x128xf32>
    %298 = arith.divf %296, %297 : vector<16x128xf32>
    %299 = math.tanh %293 : vector<16x128xf32>
    %300 = vector.extract_strided_slice %298 {offsets = [0, 0], sizes = [16, 32], strides = [1, 1]} : vector<16x128xf32> to vector<16x32xf32>
    %301 = vector.extract_strided_slice %298 {offsets = [0, 32], sizes = [16, 32], strides = [1, 1]} : vector<16x128xf32> to vector<16x32xf32>
    %302 = vector.extract_strided_slice %299 {offsets = [0, 64], sizes = [16, 32], strides = [1, 1]} : vector<16x128xf32> to vector<16x32xf32>
    %303 = vector.extract_strided_slice %298 {offsets = [0, 96], sizes = [16, 32], strides = [1, 1]} : vector<16x128xf32> to vector<16x32xf32>
    %304 = arith.mulf %301, %269 : vector<16x32xf32>
    %305 = arith.mulf %300, %302 : vector<16x32xf32>
    %306 = arith.addf %304, %305 : vector<16x32xf32>
    %307 = math.tanh %306 : vector<16x32xf32>
    %308 = arith.mulf %303, %307 : vector<16x32xf32>
    %cst_43 = arith.constant dense<0.000000e+00> : vector<16xf32>
    %309 = vector.multi_reduction <add>, %308, %cst_43 [1] : vector<16x32xf32> to vector<16xf32>
    %310 = vector.shape_cast %309 : vector<16xf32> to vector<16x1xf32>
    %cst_44 = arith.constant 3.200000e+01 : f32
    %311 = vector.broadcast %cst_44 : f32 to vector<16x1xf32>
    %312 = arith.divf %310, %311 : vector<16x1xf32>
    %c0_45 = arith.constant 0 : index
    %c0_46 = arith.constant 0 : index
    %313 = vector.load %arg4[%c0_45, %c0_46] : memref<14x8xf32, #tpu.memory_space<vmem>>, vector<4x8xf32>
    %c4 = arith.constant 4 : index
    %c0_47 = arith.constant 0 : index
    %314 = vector.load %arg4[%c4, %c0_47] : memref<14x8xf32, #tpu.memory_space<vmem>>, vector<8x8xf32>
    %c12 = arith.constant 12 : index
    %c0_48 = arith.constant 0 : index
    %315 = vector.load %arg4[%c12, %c0_48] : memref<14x8xf32, #tpu.memory_space<vmem>>, vector<1x8xf32>
    %c13 = arith.constant 13 : index
    %c0_49 = arith.constant 0 : index
    %316 = vector.load %arg4[%c13, %c0_49] : memref<14x8xf32, #tpu.memory_space<vmem>>, vector<1x8xf32>
    %c0_50 = arith.constant 0 : index
    %c0_51 = arith.constant 0 : index
    %317 = vector.load %arg0[%c0_50, %c0_51] : memref<16x16xf32, #tpu.memory_space<vmem>>, vector<16x16xf32>
    %c0_52 = arith.constant 0 : index
    %c2 = arith.constant 2 : index
    %318 = vector.load %arg1[%c0_52, %c2] : memref<16x6xf32, #tpu.memory_space<vmem>>, vector<16x4xf32>
    %cst_53 = arith.constant dense<0.000000e+00> : vector<16x8xf32>
    %319 = tpu.matmul %318, %313, %cst_53 {dimension_numbers = #tpu.dot_dimension_numbers<[1], [0], [0], [1], [0, 0, 1, 1], [], []>} : vector<16x4xf32>, vector<4x8xf32>, vector<16x8xf32> -> vector<16x8xf32>
    %cst_54 = arith.constant dense<0.000000e+00> : vector<16x8xf32>
    %320 = tpu.matmul %317, %319, %cst_54 {dimension_numbers = #tpu.dot_dimension_numbers<[1], [0], [0], [1], [0, 0, 1, 1], [], []>} : vector<16x16xf32>, vector<16x8xf32>, vector<16x8xf32> -> vector<16x8xf32>
    %321 = vector.broadcast %315 : vector<1x8xf32> to vector<16x8xf32>
    %322 = arith.addf %320, %321 : vector<16x8xf32>
    %cst_55 = arith.constant 0.000000e+00 : f32
    %323 = vector.broadcast %cst_55 : f32 to vector<16x8xf32>
    %324 = arith.maximumf %322, %323 : vector<16x8xf32>
    %cst_56 = arith.constant dense<0.000000e+00> : vector<16x8xf32>
    %325 = tpu.matmul %324, %314, %cst_56 {dimension_numbers = #tpu.dot_dimension_numbers<[1], [0], [0], [1], [0, 0, 1, 1], [], []>} : vector<16x8xf32>, vector<8x8xf32>, vector<16x8xf32> -> vector<16x8xf32>
    %cst_57 = arith.constant dense<0.000000e+00> : vector<16x8xf32>
    %326 = tpu.matmul %317, %325, %cst_57 {dimension_numbers = #tpu.dot_dimension_numbers<[1], [0], [0], [1], [0, 0, 1, 1], [], []>} : vector<16x16xf32>, vector<16x8xf32>, vector<16x8xf32> -> vector<16x8xf32>
    %327 = vector.broadcast %316 : vector<1x8xf32> to vector<16x8xf32>
    %328 = arith.addf %326, %327 : vector<16x8xf32>
    %cst_58 = arith.constant 0.000000e+00 : f32
    %329 = vector.broadcast %cst_58 : f32 to vector<16x8xf32>
    %330 = arith.maximumf %328, %329 : vector<16x8xf32>
    %c0_59 = arith.constant 0 : index
    %c0_60 = arith.constant 0 : index
    %331 = vector.load %arg5[%c0_59, %c0_60] : memref<80x64xf32, #tpu.memory_space<vmem>>, vector<8x64xf32>
    %c8_61 = arith.constant 8 : index
    %c0_62 = arith.constant 0 : index
    %332 = vector.load %arg5[%c8_61, %c0_62] : memref<80x64xf32, #tpu.memory_space<vmem>>, vector<1x64xf32>
    %c9 = arith.constant 9 : index
    %c0_63 = arith.constant 0 : index
    %333 = vector.load %arg5[%c9, %c0_63] : memref<80x64xf32, #tpu.memory_space<vmem>>, vector<1x64xf32>
    %c10 = arith.constant 10 : index
    %c0_64 = arith.constant 0 : index
    %334 = vector.load %arg5[%c10, %c0_64] : memref<80x64xf32, #tpu.memory_space<vmem>>, vector<1x64xf32>
    %c11 = arith.constant 11 : index
    %c0_65 = arith.constant 0 : index
    %335 = vector.load %arg5[%c11, %c0_65] : memref<80x64xf32, #tpu.memory_space<vmem>>, vector<1x64xf32>
    %c12_66 = arith.constant 12 : index
    %c0_67 = arith.constant 0 : index
    %336 = vector.load %arg5[%c12_66, %c0_67] : memref<80x64xf32, #tpu.memory_space<vmem>>, vector<1x64xf32>
    %c13_68 = arith.constant 13 : index
    %c0_69 = arith.constant 0 : index
    %337 = vector.load %arg5[%c13_68, %c0_69] : memref<80x64xf32, #tpu.memory_space<vmem>>, vector<1x64xf32>
    %c14 = arith.constant 14 : index
    %c0_70 = arith.constant 0 : index
    %338 = vector.load %arg5[%c14, %c0_70] : memref<80x64xf32, #tpu.memory_space<vmem>>, vector<1x1xf32>
    %c16 = arith.constant 16 : index
    %c0_71 = arith.constant 0 : index
    %339 = vector.load %arg5[%c16, %c0_71] : memref<80x64xf32, #tpu.memory_space<vmem>>, vector<64x64xf32>
    %cst_72 = arith.constant 0.000000e+00 : f32
    %340 = vector.broadcast %cst_72 : f32 to vector<16x1xf32>
    %341 = arith.maximumf %312, %340 : vector<16x1xf32>
    %c0_73 = arith.constant 0 : index
    %c0_74 = arith.constant 0 : index
    %342 = vector.load %arg1[%c0_73, %c0_74] : memref<16x6xf32, #tpu.memory_space<vmem>>, vector<16x2xf32>
    %cst_75 = arith.constant 0.000000e+00 : f32
    %343 = vector.broadcast %cst_75 : f32 to vector<16x2xf32>
    %344 = arith.maximumf %342, %343 : vector<16x2xf32>
    %cst_76 = arith.constant dense<0.000000e+00> : vector<16x64xf32>
    %345 = tpu.matmul %330, %331, %cst_76 {dimension_numbers = #tpu.dot_dimension_numbers<[1], [0], [0], [1], [0, 0, 1, 1], [], []>} : vector<16x8xf32>, vector<8x64xf32>, vector<16x64xf32> -> vector<16x64xf32>
    %346 = vector.broadcast %341 : vector<16x1xf32> to vector<16x64xf32>
    %347 = vector.broadcast %332 : vector<1x64xf32> to vector<16x64xf32>
    %348 = arith.mulf %346, %347 : vector<16x64xf32>
    %349 = arith.addf %345, %348 : vector<16x64xf32>
    %350 = vector.extract_strided_slice %344 {offsets = [0, 0], sizes = [16, 1], strides = [1, 1]} : vector<16x2xf32> to vector<16x1xf32>
    %351 = vector.broadcast %350 : vector<16x1xf32> to vector<16x64xf32>
    %352 = vector.broadcast %333 : vector<1x64xf32> to vector<16x64xf32>
    %353 = arith.mulf %351, %352 : vector<16x64xf32>
    %354 = arith.addf %349, %353 : vector<16x64xf32>
    %355 = vector.extract_strided_slice %344 {offsets = [0, 1], sizes = [16, 1], strides = [1, 1]} : vector<16x2xf32> to vector<16x1xf32>
    %356 = vector.broadcast %355 : vector<16x1xf32> to vector<16x64xf32>
    %357 = vector.broadcast %334 : vector<1x64xf32> to vector<16x64xf32>
    %358 = arith.mulf %356, %357 : vector<16x64xf32>
    %359 = arith.addf %354, %358 : vector<16x64xf32>
    %360 = vector.broadcast %335 : vector<1x64xf32> to vector<16x64xf32>
    %361 = arith.addf %359, %360 : vector<16x64xf32>
    %cst_77 = arith.constant 0.000000e+00 : f32
    %362 = vector.broadcast %cst_77 : f32 to vector<16x64xf32>
    %363 = arith.maximumf %361, %362 : vector<16x64xf32>
    %cst_78 = arith.constant dense<0.000000e+00> : vector<16x64xf32>
    %364 = tpu.matmul %363, %339, %cst_78 {dimension_numbers = #tpu.dot_dimension_numbers<[1], [0], [0], [1], [0, 0, 1, 1], [], []>} : vector<16x64xf32>, vector<64x64xf32>, vector<16x64xf32> -> vector<16x64xf32>
    %365 = vector.broadcast %336 : vector<1x64xf32> to vector<16x64xf32>
    %366 = arith.addf %364, %365 : vector<16x64xf32>
    %cst_79 = arith.constant 0.000000e+00 : f32
    %367 = vector.broadcast %cst_79 : f32 to vector<16x64xf32>
    %368 = arith.maximumf %366, %367 : vector<16x64xf32>
    %369 = vector.broadcast %337 : vector<1x64xf32> to vector<16x64xf32>
    %370 = arith.mulf %368, %369 : vector<16x64xf32>
    %cst_80 = arith.constant dense<0.000000e+00> : vector<16xf32>
    %371 = vector.multi_reduction <add>, %370, %cst_80 [1] : vector<16x64xf32> to vector<16xf32>
    %372 = vector.shape_cast %371 : vector<16xf32> to vector<16x1xf32>
    %373 = vector.broadcast %338 : vector<1x1xf32> to vector<16x1xf32>
    %374 = arith.addf %372, %373 : vector<16x1xf32>
    %c0_81 = arith.constant 0 : index
    %c0_82 = arith.constant 0 : index
    %375 = vector.load %arg6[%c0_81, %c0_82] : memref<16x1xf32, #tpu.memory_space<vmem>>, vector<16x1xf32>
    tpu.vector_store %arg6[%c0_81, %c0_82], %374 {strides = array<i32>} : memref<16x1xf32, #tpu.memory_space<vmem>>, vector<16x1xf32>,
    return
  }
}

</mosaic_0001>

<bundles_post_ra>
// kernel: mynet_forward.1
= control target key start
LH: loop header
LB: loop body
LE: loop exit
PB: predicated region body
PF: predicated region fallthrough
CT: control target
= control target key end

     0   :  { %vm58_vm0 = vcmask 64512   ;;  %v4187_v3 = vmov 0.0   ;;  %s4188_s13 = smov 64   ;;  %s4189_s14 = smov 32   ;;  %vm252_vm1 = vcmask 261120   ;;  %vm395_vm2 = vcmask 523264   ;;  %s4887_s3 = inlined_call_operand.vmem [shape: f32[106,128], index: 3, kind: input, shape index: {}]   ;;  %s4888_s2 = inlined_call_operand.vmem [shape: f32[128,8], index: 2, kind: input, shape index: {}]   ;;  %s4889_s1 = inlined_call_operand.vmem [shape: f32[16,6], index: 1, kind: input, shape index: {}]   ;;  %s4890_s4 = inlined_call_operand.vmem [shape: f32[14,8], index: 4, kind: input, shape index: {}]   ;;  %s4891_s0 = inlined_call_operand.vmem [shape: f32[16,16], index: 0, kind: input, shape index: {}]   ;;  %s4892_s5 = inlined_call_operand.vmem [shape: f32[80,64], index: 5, kind: input, shape index: {}]   ;;  %s4893_s6 = inlined_call_operand.vmem [shape: f32[16,1], index: 6, kind: output, shape index: {}]  }
   0x1   :  { %v24_v0 = vld [vmem:[%s4887_s3 + $0x8] sm:$0xff]  ;;  %v25_v1 = vld [vmem:[%s4887_s3 + $0x10] sm:$0xff]  ;;  %v23_v2 = vld [vmem:[%s4887_s3] sm:$0xff]  ;;  %3391 = vmatprep.mubr.f32.mxu1 %v4187_v3  ;;  %s4190_s21 = smov 126   ;;  %vm2493_vm3 = vcmask 1043456   ;;  %vm2488_vm4 = vcmask 31744  }
   0x2   :  { %v4237_v4 = vpack.c.bf16 %v25_v1, %v24_v0  ;;  %3357 = vmatprep.subr.mxu0 %v23_v2  ;;  %v38_v5 = vld [vmem:[%s4888_s2] sm:$0xff]  ;;  %v26_v6 = vld [vmem:[%s4887_s3 + $0x18] sm:$0xff]  ;;  %v39_v9 = vld [vmem:[%s4888_s2 + $0x8] sm:$0xff]  ;;  %vm2576_vm5 = vcmask 130048   ;;  %vm3076_vm6 = vcmask 7168  }
   0x3   :  { %v27_v7 = vld [vmem:[%s4887_s3 + $0x20] sm:$0xff]  ;;  %3358 = vmatpush3.msra.mxu0 %v23_v2  ;;  %3359 = vmatprep.mubr.msk.f32.mxu0 %vm58_vm0, %v38_v5  ;;  %v4267_v12 = vld [vmem:[%s4887_s3 + $0x68] ss:$0 sm:$0xff]  ;;  %v40_v39 = vld [vmem:[%s4888_s2 + $0x10] sm:$0xff] }
   0x4   :  { %v4249_v8 = vpack.c.bf16 %v27_v7, %v26_v6  ;;  %3672 = vmatprep.subr.bf16.mxu1 %v4237_v4  ;;  %3360 = vmatmul.mubr.msk.f32.vlgmr.msra.gmra.mrb[0].mxu0 %vm58_vm0, %v39_v9  ;;  %v41_v40 = vld [vmem:[%s4888_s2 + $0x18] sm:$0xff]  ;;  %v42_v41 = vld [vmem:[%s4888_s2 + $0x20] sm:$0xff]  ;;  %v28_v42 = vld [vmem:[%s4887_s3 + $0x28] sm:$0xff] }
   0x5   :  { %3674 = vmatpush3.bf16.msra.mxu1 %v4237_v4  ;;  %3696 = vmatprep.subr.bf16.mxu0 %v4237_v4  ;;  %v43_v43 = vld [vmem:[%s4888_s2 + $0x28] sm:$0xff]  ;;  %v29_v44 = vld [vmem:[%s4887_s3 + $0x30] sm:$0xff]  ;;  %v30_v47 = vld [vmem:[%s4887_s3 + $0x38] sm:$0xff] }
   0x6   :  { %3676 = vmatprep.subr.bf16.mxu1 %v4249_v8  ;;  %3698 = vmatpush3.bf16.msra.mxu0 %v4237_v4  ;;  %v44_v45 = vld [vmem:[%s4888_s2 + $0x30] sm:$0xff]  ;;  %v4313_v46 = vpack.c.bf16 %v29_v44, %v28_v42  ;;  %v31_v48 = vld [vmem:[%s4887_s3 + $0x40] sm:$0xff]  ;;  %v32_v51 = vld [vmem:[%s4887_s3 + $0x48] sm:$0xff] }
   0x7   :  { %3700 = vmatprep.subr.bf16.mxu0 %v4249_v8  ;;  %3362 = vmatprep.mubr.msk.f32.mxu0 %vm58_vm0, %v40_v39  ;;  %v4321_v49 = vpack.c.bf16 %v31_v48, %v30_v47  ;;  %v33_v52 = vld [vmem:[%s4887_s3 + $0x50] sm:$0xff]  ;;  %v45_v53 = vld [vmem:[%s4888_s2 + $0x38] sm:$0xff]  ;;  %v46_v54 = vld [vmem:[%s4888_s2 + $0x40] sm:$0xff] }
   0x8   :  { %3363 = vmatmul.mubr.msk.f32.gmra.mrb[2].mxu0 %vm58_vm0, %v41_v40  ;;  %v4341_v55 = vpack.c.bf16 %v33_v52, %v32_v51  ;;  %v47_v57 = vld [vmem:[%s4888_s2 + $0x48] sm:$0xff]  ;;  %v48_v58 = vld [vmem:[%s4888_s2 + $0x50] sm:$0xff]  ;;  %v49_v59 = vld [vmem:[%s4888_s2 + $0x58] sm:$0xff] }
   0x9   :  { %3678 = vmatpush3.bf16.msra.mxu1 %v4249_v8  ;;  %3365 = vmatprep.mubr.msk.f32.mxu0 %vm58_vm0, %v42_v41  ;;  %v50_v60 = vld [vmem:[%s4888_s2 + $0x60] sm:$0xff]  ;;  %v51_v61 = vld [vmem:[%s4888_s2 + $0x68] sm:$0xff]  ;;  %v52_v62 = vld [vmem:[%s4888_s2 + $0x70] sm:$0xff] }
   0xa   :  { %3702 = vmatpush3.bf16.msra.mxu0 %v4249_v8  ;;  %3680 = vmatprep.subr.bf16.mxu1 %v4313_v46  ;;  %v53_v63 = vld [vmem:[%s4888_s2 + $0x78] sm:$0xff]  ;;  %v35_v1 = vld [vmem:[%s4887_s3 + $0x60] sm:$0xff] }
   0xb   :  { %3720 = vmatprep.subr.bf16.mxu0 %v4237_v4  ;;  %v34_v0 = vld [vmem:[%s4887_s3 + $0x58] sm:$0xff] }
   0xc   :  { %3392 = vmatmul.mubr.f32.vlgmr.msra.gmra.mrb[0].mxu1 %v4187_v3  ;;  %3366 = vmatmul.mubr.msk.f32.gmra.mrb[4].mxu0 %vm58_vm0, %v43_v43  ;;  %v4383_v2 = vpack.c.bf16 %v35_v1, %v34_v0 }
   0xd   :  { %3368 = vmatprep.mubr.msk.f32.mxu0 %vm58_vm0, %v44_v45  ;;  %3682 = vmatpush3.bf16.msra.mxu1 %v4313_v46 }
   0xe   :  { %3684 = vmatprep.subr.bf16.mxu1 %v4321_v49 }
  0x10   :  { %3369 = vmatmul.mubr.msk.f32.gmra.mrb[6].mxu0 %vm58_vm0, %v45_v53 }
  0x11   :  { %3371 = vmatprep.mubr.msk.f32.mxu0 %vm58_vm0, %v46_v54  ;;  %3686 = vmatpush3.bf16.msra.mxu1 %v4321_v49 }
  0x12   :  { %3688 = vmatprep.subr.bf16.mxu1 %v4341_v55 }
  0x14   :  { %3372 = vmatmul.mubr.msk.f32.gmra.mrb[8].mxu0 %vm58_vm0, %v47_v57 }
  0x15   :  { %3374 = vmatprep.mubr.msk.f32.mxu0 %vm58_vm0, %v48_v58  ;;  %3690 = vmatpush3.bf16.msra.mxu1 %v4341_v55 }
  0x16   :  { %3692 = vmatprep.subr.bf16.mxu1 %v4383_v2 }
  0x18   :  { %3375 = vmatmul.mubr.msk.f32.gmra.mrb[10].mxu0 %vm58_vm0, %v49_v59 }
  0x19   :  { %3377 = vmatprep.mubr.msk.f32.mxu0 %vm58_vm0, %v50_v60  ;;  %3694 = vmatpush3.bf16.msra.mxu1 %v4383_v2 }
  0x1a   :  { %3704 = vmatprep.subr.bf16.mxu1 %v4313_v46 }
  0x1c   :  { %3378 = vmatmul.mubr.msk.f32.gmra.mrb[12].mxu0 %vm58_vm0, %v51_v61 }
  0x1d   :  { %3380 = vmatprep.mubr.msk.f32.mxu0 %vm58_vm0, %v52_v62 }
  0x20   :  { %3381 = vmatmul.mubr.msk.f32.gmra.mrb[14].mxu0 %vm58_vm0, %v53_v63 }
  0xd7   :  { %v3361_v10 = vpop.f32.mrb[0].mxu0 }
  0xd8   :  { %v173_v11 = vpop.f32.mrb[1].mxu0  ;;  %v179_v13 = vadd.f32 %v3361_v10, %v4267_v12 }
  0xd9   :  { %v174_v14 = vadd.f32 %v4267_v12, %v173_v11 }
  0xdf   :  { %v3393_v15 = vpop.f32.mrb[0].mxu1 }
  0xe0   :  { %v332_v16 = vadd.f32 %v3393_v15, %v179_v13  ;;  %v322_v17 = vpop.f32.mrb[1].mxu1 }
  0xe1   :  { %v331_v18 = vadd.f32 %v322_v17, %v174_v14 }
  0xe2   :  { %v3101_v22 = vmul.f32 -1.442695, %v332_v16 }
  0xe3   :  { %3929 = vtanh.f32 %v331_v18  ;;  %v3100_v21 = vmul.f32 -1.442695, %v331_v18  ;;  %v4413_v18 = vld [vmem:[%s4887_s3 + $0x69] ss:$0 sm:$0xff] }
  0xe4   :  { %3931 = vtanh.f32 %v332_v16 }
  0xe5   :  { %3933 = vpow2.f32 %v3100_v21 }
  0xe6   :  { %3935 = vpow2.f32 %v3101_v22 }
  0xed   :  { %v3930_v19 = vpop.eup %3929 }
  0xee   :  { %351 = vrot.lane.b32.xlu0 %v3930_v19, %s4188_s13  ;;  %v3932_v20 = vpop.eup %3931 }
  0xef   :  { %v3934_v23 = vpop.eup %3933 }
  0xf0   :  { %v339_v24 = vadd.f32 1.0, %v3934_v23  ;;  %v3936_v25 = vpop.eup %3935 }
  0xf1   :  { %v340_v26 = vadd.f32 1.0, %v3936_v25 }
  0xf2   :  { %353 = vrot.lane.b32.xlu0 %v3932_v20, %s4188_s13  ;;  %3937 = vrcp.f32 %v339_v24 }
  0xf3   :  { %3939 = vrcp.f32 %v340_v26 }
  0xfc   :  { %v4273_v27 = vpop.eup %3937 }
  0xfd   :  { %v4277_v30 = vpop.eup %3939  ;;  %v347_v33 = vmul.f32 0.0, %v4273_v27 }
  0xfe   :  { %v348_v36 = vmul.f32 0.0, %v4277_v30 }
 0x160   :  { %v352_v28 = vpop.permute.xlu0 %351 }
 0x161   :  { %v357_v29 = vmul.f32 %v4273_v27, %v352_v28 }
 0x163   :  { %361 = vrot.lane.b32.xlu1 %v357_v29, %s4189_s14 }
 0x164   :  { %v354_v31 = vpop.permute.xlu0 %353 }
 0x165   :  { %v358_v32 = vmul.f32 %v4277_v30, %v354_v31 }
 0x167   :  { %363 = vrot.lane.b32.xlu1 %v358_v32, %s4189_s14 }
 0x1d5   :  { %v362_v34 = vpop.permute.xlu1 %361 }
 0x1d6   :  { %v4282_v35 = vadd.f32 %v362_v34, %v347_v33 }
 0x1d8   :  { %3941 = vtanh.f32 %v4282_v35 }
 0x1d9   :  { %v364_v37 = vpop.permute.xlu1 %363 }
 0x1da   :  { %v4286_v38 = vadd.f32 %v364_v37, %v348_v36 }
 0x1dc   :  { %3943 = vtanh.f32 %v4286_v38 }
 0x1e2   :  { %v3942_v50 = vpop.eup %3941 }
 0x1e3   :  { %373 = vrot.lane.b32.xlu0 %v3942_v50, %s4188_s13 }
 0x1e6   :  { %v3944_v56 = vpop.eup %3943 }
 0x1e7   :  { %375 = vrot.lane.b32.xlu1 %v3944_v56, %s4188_s13 }
 0x255   :  { %v374_v3 = vpop.permute.xlu0 %373 }
 0x256   :  { %v379_v5 = vmul.f32 %v4273_v27, %v374_v3 }
 0x258   :  { %383 = vrot.lane.b32.xlu0 %v379_v5, %s4189_s14 }
 0x259   :  { %v376_v6 = vpop.permute.xlu1 %375 }
 0x25a   :  { %v380_v7 = vmul.f32 %v4277_v30, %v376_v6 }
 0x25c   :  { %385 = vrot.lane.b32.xlu1 %v380_v7, %s4189_s14 }
 0x2ca   :  { %v384_v9 = vpop.permute.xlu0 %383 }
 0x2cb   :  { %3421 = vmatprep.mubr.msk.f32.mxu0 %vm252_vm1, %v384_v9  ;;  %v389_v10 = vsel %vm252_vm1, %v384_v9, 0.0 }
 0x2cc   :  { %3410 = vmatprep.mubr.msk.f32.mxu1 %vm395_vm2, %v389_v10 }
 0x2ce   :  { %v386_v11 = vpop.permute.xlu1 %385 }
 0x2cf   :  { %v390_v13 = vsel %vm252_vm1, %v386_v11, 0.0  ;;  %3422 = vmatmul.mubr.msk.f32.vlgmr.msra.gmra.mrb[2].mxu0 %vm252_vm1, %v386_v11 }
 0x2d0   :  { %3411 = vmatmul.mubr.msk.f32.vlgmr.msra.gmra.mrb[2].mxu1 %vm395_vm2, %v390_v13  ;;  %3722 = vmatpush3.bf16.msra.mxu0 %v4237_v4 }
 0x2d1   :  { %3706 = vmatpush3.bf16.msra.mxu1 %v4313_v46  ;;  %3724 = vmatprep.subr.bf16.mxu0 %v4249_v8 }
 0x2d2   :  { %3708 = vmatprep.subr.bf16.mxu1 %v4321_v49 }
 0x2d4   :  { %3726 = vmatpush3.bf16.msra.mxu0 %v4249_v8 }
 0x2d5   :  { %3710 = vmatpush3.bf16.msra.mxu1 %v4321_v49  ;;  %3744 = vmatprep.subr.bf16.mxu0 %v4237_v4 }
 0x2d6   :  { %3712 = vmatprep.subr.bf16.mxu1 %v4341_v55 }
 0x2d9   :  { %3714 = vmatpush3.bf16.msra.mxu1 %v4341_v55 }
 0x2da   :  { %3716 = vmatprep.subr.bf16.mxu1 %v4383_v2 }
 0x2dd   :  { %3718 = vmatpush3.bf16.msra.mxu1 %v4383_v2 }
 0x2de   :  { %3728 = vmatprep.subr.bf16.mxu1 %v4313_v46 }
 0x3a2   :  { %v3423_v14 = vpop.f32.mrb[2].mxu0 }
 0x3a3   :  { %v3412_v15 = vpop.f32.mrb[2].mxu1  ;;  %v595_v16 = vpop.f32.mrb[3].mxu0  ;;  %v3891_v21 = vadd.f32 %v3423_v14, %v4267_v12 }
 0x3a4   :  { %v468_v17 = vpop.f32.mrb[3].mxu1  ;;  %v3892_v19 = vadd.f32 %v4267_v12, %v595_v16  ;;  %v474_v22 = vadd.f32 %v3412_v15, %v4413_v18 }
 0x3a5   :  { %v469_v20 = vadd.f32 %v4413_v18, %v468_v17  ;;  %v3110_v29 = vmul.f32 -1.442695, %v3891_v21 }
 0x3a6   :  { %3945 = vtanh.f32 %v3892_v19  ;;  %v3109_v27 = vmul.f32 -1.442695, %v3892_v19  ;;  %v3106_v30 = vmul.f32 -1.442695, %v474_v22 }
 0x3a7   :  { %3947 = vtanh.f32 %v469_v20  ;;  %v3105_v28 = vmul.f32 -1.442695, %v469_v20 }
 0x3a8   :  { %3949 = vtanh.f32 %v3891_v21 }
 0x3a9   :  { %3951 = vtanh.f32 %v474_v22 }
 0x3aa   :  { %3953 = vpow2.f32 %v3109_v27 }
 0x3ab   :  { %3955 = vpow2.f32 %v3105_v28 }
 0x3ac   :  { %3957 = vpow2.f32 %v3110_v29 }
 0x3ad   :  { %3959 = vpow2.f32 %v3106_v30 }
 0x3b0   :  { %v3946_v23 = vpop.eup %3945 }
 0x3b1   :  { %624 = vrot.lane.b32.xlu1 %v3946_v23, %s4188_s13  ;;  %v3948_v24 = vpop.eup %3947 }
 0x3b2   :  { %495 = vrot.lane.b32.xlu0 %v3948_v24, %s4188_s13  ;;  %v3950_v25 = vpop.eup %3949 }
 0x3b3   :  { %v3952_v26 = vpop.eup %3951 }
 0x3b4   :  { %v3954_v31 = vpop.eup %3953 }
 0x3b5   :  { %626 = vrot.lane.b32.xlu1 %v3950_v25, %s4188_s13  ;;  %v3956_v32 = vpop.eup %3955  ;;  %v612_v33 = vadd.f32 1.0, %v3954_v31 }
 0x3b6   :  { %497 = vrot.lane.b32.xlu0 %v3952_v26, %s4188_s13  ;;  %v3958_v34 = vpop.eup %3957  ;;  %v483_v36 = vadd.f32 1.0, %v3956_v32 }
 0x3b7   :  { %v3960_v37 = vpop.eup %3959  ;;  %v613_v39 = vadd.f32 1.0, %v3958_v34  ;;  %3961 = vrcp.f32 %v612_v33 }
 0x3b8   :  { %v484_v40 = vadd.f32 1.0, %v3960_v37  ;;  %3963 = vrcp.f32 %v483_v36 }
 0x3b9   :  { %3965 = vrcp.f32 %v613_v39 }
 0x3ba   :  { %3967 = vrcp.f32 %v484_v40 }
 0x3c1   :  { %v3962_v41 = vpop.eup %3961 }
 0x3c2   :  { %v3964_v44 = vpop.eup %3963  ;;  %v620_v56 = vmul.f32 %v3962_v41, %v4282_v35 }
 0x3c3   :  { %v3966_v48 = vpop.eup %3965  ;;  %v491_v59 = vmul.f32 0.0, %v3964_v44 }
 0x3c4   :  { %v3968_v52 = vpop.eup %3967  ;;  %v621_v62 = vmul.f32 %v3966_v48, %v4286_v38 }
 0x3c5   :  { %v492_v1 = vmul.f32 0.0, %v3968_v52 }
 0x423   :  { %v625_v42 = vpop.permute.xlu1 %624 }
 0x424   :  { %v630_v43 = vmul.f32 %v3962_v41, %v625_v42  ;;  %v496_v45 = vpop.permute.xlu0 %495 }
 0x425   :  { %v501_v47 = vmul.f32 %v3964_v44, %v496_v45 }
 0x426   :  { %634 = vrot.lane.b32.xlu1 %v630_v43, %s4189_s14 }
 0x427   :  { %v627_v50 = vpop.permute.xlu1 %626  ;;  %505 = vrot.lane.b32.xlu0 %v501_v47, %s4189_s14 }
 0x428   :  { %v631_v51 = vmul.f32 %v3966_v48, %v627_v50  ;;  %v498_v53 = vpop.permute.xlu0 %497 }
 0x429   :  { %v502_v54 = vmul.f32 %v3968_v52, %v498_v53 }
 0x42a   :  { %636 = vrot.lane.b32.xlu1 %v631_v51, %s4189_s14 }
 0x42b   :  { %507 = vrot.lane.b32.xlu0 %v502_v54, %s4189_s14 }
 0x498   :  { %v635_v57 = vpop.permute.xlu1 %634 }
 0x499   :  { %v4428_v58 = vadd.f32 %v635_v57, %v620_v56  ;;  %v506_v60 = vpop.permute.xlu0 %505 }
 0x49a   :  { %v4431_v61 = vadd.f32 %v506_v60, %v491_v59 }
 0x49b   :  { %3969 = vtanh.f32 %v4428_v58 }
 0x49c   :  { %v637_v63 = vpop.permute.xlu1 %636  ;;  %3971 = vtanh.f32 %v4431_v61 }
 0x49d   :  { %v4435_v0 = vadd.f32 %v637_v63, %v621_v62  ;;  %v508_v3 = vpop.permute.xlu0 %507 }
 0x49e   :  { %v4438_v35 = vadd.f32 %v508_v3, %v492_v1 }
 0x49f   :  { %3973 = vtanh.f32 %v4435_v0 }
 0x4a0   :  { %3975 = vtanh.f32 %v4438_v35 }
 0x4a5   :  { %v3970_v5 = vpop.eup %3969 }
 0x4a6   :  { %646 = vrot.lane.b32.xlu1 %v3970_v5, %s4188_s13  ;;  %v3972_v6 = vpop.eup %3971 }
 0x4a7   :  { %517 = vrot.lane.b32.xlu0 %v3972_v6, %s4188_s13 }
 0x4a9   :  { %v3974_v38 = vpop.eup %3973 }
 0x4aa   :  { %648 = vrot.lane.b32.xlu1 %v3974_v38, %s4188_s13  ;;  %v3976_v7 = vpop.eup %3975 }
 0x4ab   :  { %519 = vrot.lane.b32.xlu0 %v3976_v7, %s4188_s13 }
 0x518   :  { %v647_v9 = vpop.permute.xlu1 %646 }
 0x519   :  { %v652_v10 = vmul.f32 %v3962_v41, %v647_v9  ;;  %v518_v11 = vpop.permute.xlu0 %517 }
 0x51a   :  { %v523_v13 = vmul.f32 %v3964_v44, %v518_v11 }
 0x51b   :  { %656 = vrot.lane.b32.xlu0 %v652_v10, %s4189_s14 }
 0x51c   :  { %v649_v14 = vpop.permute.xlu1 %648  ;;  %664 = vrot.lane.b32.xlu1 %v523_v13, %s4188_s13 }
 0x51d   :  { %v653_v15 = vmul.f32 %v3966_v48, %v649_v14  ;;  %v520_v16 = vpop.permute.xlu0 %519 }
 0x51e   :  { %v524_v17 = vmul.f32 %v3968_v52, %v520_v16 }
 0x51f   :  { %658 = vrot.lane.b32.xlu0 %v653_v15, %s4189_s14 }
 0x520   :  { %666 = vrot.lane.b32.xlu1 %v524_v17, %s4188_s13 }
 0x58d   :  { %v657_v19 = vpop.permute.xlu0 %656 }
 0x58e   :  { %3451 = vmatprep.mubr.msk.f32.mxu0 %vm252_vm1, %v657_v19  ;;  %v665_v20 = vpop.permute.xlu1 %664 }
 0x58f   :  { %v670_v21 = vsel %vm252_vm1, %v657_v19, %v665_v20 }
 0x590   :  { %3440 = vmatprep.mubr.msk.f32.mxu1 %vm395_vm2, %v670_v21 }
 0x591   :  { %v659_v22 = vpop.permute.xlu0 %658 }
 0x592   :  { %3452 = vmatmul.mubr.msk.f32.vlgmr.msra.gmra.mrb[4].mxu0 %vm252_vm1, %v659_v22  ;;  %v667_v23 = vpop.permute.xlu1 %666 }
 0x593   :  { %3746 = vmatpush3.bf16.msra.mxu0 %v4237_v4  ;;  %v671_v24 = vsel %vm252_vm1, %v659_v22, %v667_v23 }
 0x594   :  { %3748 = vmatprep.subr.bf16.mxu0 %v4249_v8  ;;  %3441 = vmatmul.mubr.msk.f32.vlgmr.msra.gmra.mrb[4].mxu1 %vm395_vm2, %v671_v24 }
 0x595   :  { %3730 = vmatpush3.bf16.msra.mxu1 %v4313_v46 }
 0x596   :  { %3732 = vmatprep.subr.bf16.mxu1 %v4321_v49 }
 0x597   :  { %3750 = vmatpush3.bf16.msra.mxu0 %v4249_v8 }
 0x598   :  { %3768 = vmatprep.subr.bf16.mxu0 %v4237_v4 }
 0x599   :  { %3734 = vmatpush3.bf16.msra.mxu1 %v4321_v49 }
 0x59a   :  { %3736 = vmatprep.subr.bf16.mxu1 %v4341_v55 }
 0x59d   :  { %3738 = vmatpush3.bf16.msra.mxu1 %v4341_v55 }
 0x59e   :  { %3740 = vmatprep.subr.bf16.mxu1 %v4383_v2 }
 0x5a1   :  { %3742 = vmatpush3.bf16.msra.mxu1 %v4383_v2 }
 0x5a2   :  { %3752 = vmatprep.subr.bf16.mxu1 %v4313_v46 }
 0x665   :  { %v3453_v25 = vpop.f32.mrb[4].mxu0 }
 0x666   :  { %v871_v26 = vpop.f32.mrb[5].mxu0  ;;  %v3893_v29 = vadd.f32 %v3453_v25, %v4267_v12 }
 0x667   :  { %v3894_v27 = vadd.f32 %v4267_v12, %v871_v26  ;;  %v3442_v28 = vpop.f32.mrb[4].mxu1 }
 0x668   :  { %v744_v30 = vpop.f32.mrb[5].mxu1  ;;  %v750_v32 = vadd.f32 %v3442_v28, %v4413_v18  ;;  %v3118_v40 = vmul.f32 -1.442695, %v3893_v29 }
 0x669   :  { %3977 = vtanh.f32 %v3894_v27  ;;  %v745_v31 = vadd.f32 %v4413_v18, %v744_v30  ;;  %v3117_v39 = vmul.f32 -1.442695, %v3894_v27 }
 0x66a   :  { %3979 = vtanh.f32 %v3893_v29  ;;  %v3114_v42 = vmul.f32 -1.442695, %v750_v32 }
 0x66b   :  { %3981 = vtanh.f32 %v745_v31  ;;  %v3113_v41 = vmul.f32 -1.442695, %v745_v31 }
 0x66c   :  { %3983 = vtanh.f32 %v750_v32 }
 0x66d   :  { %3985 = vpow2.f32 %v3117_v39 }
 0x66e   :  { %3987 = vpow2.f32 %v3118_v40 }
 0x66f   :  { %3989 = vpow2.f32 %v3113_v41 }
 0x670   :  { %3991 = vpow2.f32 %v3114_v42 }
 0x673   :  { %v3978_v33 = vpop.eup %3977 }
 0x674   :  { %900 = vrot.lane.b32.xlu1 %v3978_v33, %s4188_s13  ;;  %v3980_v34 = vpop.eup %3979 }
 0x675   :  { %v3982_v36 = vpop.eup %3981 }
 0x676   :  { %771 = vrot.lane.b32.xlu0 %v3982_v36, %s4188_s13  ;;  %v3984_v37 = vpop.eup %3983 }
 0x677   :  { %v3986_v43 = vpop.eup %3985 }
 0x678   :  { %902 = vrot.lane.b32.xlu1 %v3980_v34, %s4188_s13  ;;  %v888_v44 = vadd.f32 1.0, %v3986_v43  ;;  %v3988_v45 = vpop.eup %3987 }
 0x679   :  { %v3990_v47 = vpop.eup %3989  ;;  %v889_v48 = vadd.f32 1.0, %v3988_v45 }
 0x67a   :  { %773 = vrot.lane.b32.xlu0 %v3984_v37, %s4188_s13  ;;  %3993 = vrcp.f32 %v888_v44  ;;  %v759_v50 = vadd.f32 1.0, %v3990_v47  ;;  %v3992_v51 = vpop.eup %3991 }
 0x67b   :  { %3995 = vrcp.f32 %v889_v48  ;;  %v760_v52 = vadd.f32 1.0, %v3992_v51 }
 0x67c   :  { %3997 = vrcp.f32 %v759_v50 }
 0x67d   :  { %3999 = vrcp.f32 %v760_v52 }
 0x684   :  { %v3994_v53 = vpop.eup %3993 }
 0x685   :  { %v3996_v57 = vpop.eup %3995  ;;  %v896_v38 = vmul.f32 %v3994_v53, %v4428_v58 }
 0x686   :  { %v3998_v62 = vpop.eup %3997  ;;  %v897_v10 = vmul.f32 %v3996_v57, %v4435_v0 }
 0x687   :  { %v4000_v3 = vpop.eup %3999  ;;  %v767_v13 = vmul.f32 %v3998_v62, %v4431_v61 }
 0x688   :  { %v768_v58 = vmul.f32 %v4000_v3, %v4438_v35 }
 0x6e6   :  { %v901_v54 = vpop.permute.xlu1 %900 }
 0x6e7   :  { %v906_v56 = vmul.f32 %v3994_v53, %v901_v54 }
 0x6e8   :  { %v772_v63 = vpop.permute.xlu0 %771 }
 0x6e9   :  { %910 = vrot.lane.b32.xlu1 %v906_v56, %s4189_s14  ;;  %v777_v1 = vmul.f32 %v3998_v62, %v772_v63 }
 0x6ea   :  { %v903_v59 = vpop.permute.xlu1 %902 }
 0x6eb   :  { %v907_v60 = vmul.f32 %v3996_v57, %v903_v59  ;;  %781 = vrot.lane.b32.xlu0 %v777_v1, %s4189_s14 }
 0x6ec   :  { %v774_v5 = vpop.permute.xlu0 %773 }
 0x6ed   :  { %912 = vrot.lane.b32.xlu1 %v907_v60, %s4189_s14  ;;  %v778_v6 = vmul.f32 %v4000_v3, %v774_v5 }
 0x6ef   :  { %783 = vrot.lane.b32.xlu0 %v778_v6, %s4189_s14 }
 0x75b   :  { %v911_v7 = vpop.permute.xlu1 %910 }
 0x75c   :  { %v4480_v9 = vadd.f32 %v911_v7, %v896_v38 }
 0x75d   :  { %v782_v15 = vpop.permute.xlu0 %781 }
 0x75e   :  { %4001 = vtanh.f32 %v4480_v9  ;;  %v4487_v16 = vadd.f32 %v782_v15, %v767_v13 }
 0x75f   :  { %v913_v11 = vpop.permute.xlu1 %912 }
 0x760   :  { %v4485_v14 = vadd.f32 %v913_v11, %v897_v10 }
 0x761   :  { %v784_v17 = vpop.permute.xlu0 %783 }
 0x762   :  { %4003 = vtanh.f32 %v4485_v14  ;;  %v4492_v19 = vadd.f32 %v784_v17, %v768_v58 }
 0x763   :  { %4005 = vtanh.f32 %v4487_v16 }
 0x764   :  { %4007 = vtanh.f32 %v4492_v19 }
 0x768   :  { %v4002_v20 = vpop.eup %4001 }
 0x769   :  { %922 = vrot.lane.b32.xlu1 %v4002_v20, %s4188_s13 }
 0x76c   :  { %v4004_v61 = vpop.eup %4003 }
 0x76d   :  { %924 = vrot.lane.b32.xlu1 %v4004_v61, %s4188_s13  ;;  %v4006_v0 = vpop.eup %4005 }
 0x76e   :  { %793 = vrot.lane.b32.xlu0 %v4006_v0, %s4188_s13  ;;  %v4008_v21 = vpop.eup %4007 }
 0x772   :  { %795 = vrot.lane.b32.xlu0 %v4008_v21, %s4188_s13 }
 0x7db   :  { %v923_v22 = vpop.permute.xlu1 %922 }
 0x7dc   :  { %v928_v23 = vmul.f32 %v3994_v53, %v923_v22 }
 0x7de   :  { %932 = vrot.lane.b32.xlu0 %v928_v23, %s4189_s14 }
 0x7df   :  { %v925_v35 = vpop.permute.xlu1 %924 }
 0x7e0   :  { %v929_v24 = vmul.f32 %v3996_v57, %v925_v35  ;;  %v794_v25 = vpop.permute.xlu0 %793 }
 0x7e1   :  { %v799_v26 = vmul.f32 %v3998_v62, %v794_v25 }
 0x7e2   :  { %934 = vrot.lane.b32.xlu0 %v929_v24, %s4189_s14 }
 0x7e3   :  { %940 = vrot.lane.b32.xlu1 %v799_v26, %s4188_s13 }
 0x7e4   :  { %v796_v27 = vpop.permute.xlu0 %795 }
 0x7e5   :  { %v800_v28 = vmul.f32 %v4000_v3, %v796_v27 }
 0x7e7   :  { %942 = vrot.lane.b32.xlu1 %v800_v28, %s4188_s13 }
 0x850   :  { %v933_v29 = vpop.permute.xlu0 %932 }
 0x851   :  { %3481 = vmatprep.mubr.msk.f32.mxu0 %vm252_vm1, %v933_v29 }
 0x854   :  { %v935_v30 = vpop.permute.xlu0 %934 }
 0x855   :  { %3482 = vmatmul.mubr.msk.f32.vlgmr.msra.gmra.mrb[6].mxu0 %vm252_vm1, %v935_v30  ;;  %v941_v31 = vpop.permute.xlu1 %940 }
 0x856   :  { %3770 = vmatpush3.bf16.msra.mxu0 %v4237_v4  ;;  %v946_v32 = vsel %vm252_vm1, %v933_v29, %v941_v31 }
 0x857   :  { %3772 = vmatprep.subr.bf16.mxu0 %v4249_v8  ;;  %3470 = vmatprep.mubr.msk.f32.mxu1 %vm395_vm2, %v946_v32 }
 0x859   :  { %v943_v33 = vpop.permute.xlu1 %942 }
 0x85a   :  { %3774 = vmatpush3.bf16.msra.mxu0 %v4249_v8  ;;  %v947_v34 = vsel %vm252_vm1, %v935_v30, %v943_v33 }
 0x85b   :  { %3792 = vmatprep.subr.bf16.mxu0 %v4237_v4  ;;  %3471 = vmatmul.mubr.msk.f32.vlgmr.msra.gmra.mrb[6].mxu1 %vm395_vm2, %v947_v34 }
 0x85c   :  { %3754 = vmatpush3.bf16.msra.mxu1 %v4313_v46 }
 0x85d   :  { %3756 = vmatprep.subr.bf16.mxu1 %v4321_v49 }
 0x860   :  { %3758 = vmatpush3.bf16.msra.mxu1 %v4321_v49 }
 0x861   :  { %3760 = vmatprep.subr.bf16.mxu1 %v4341_v55 }
 0x864   :  { %3762 = vmatpush3.bf16.msra.mxu1 %v4341_v55 }
 0x865   :  { %3764 = vmatprep.subr.bf16.mxu1 %v4383_v2 }
 0x868   :  { %3766 = vmatpush3.bf16.msra.mxu1 %v4383_v2 }
 0x869   :  { %3776 = vmatprep.subr.bf16.mxu1 %v4313_v46 }
 0x928   :  { %v3483_v36 = vpop.f32.mrb[6].mxu0 }
 0x929   :  { %v1147_v37 = vpop.f32.mrb[7].mxu0  ;;  %v3895_v40 = vadd.f32 %v3483_v36, %v4267_v12 }
 0x92a   :  { %v3896_v39 = vadd.f32 %v4267_v12, %v1147_v37 }
 0x92b   :  { %v3126_v52 = vmul.f32 -1.442695, %v3895_v40 }
 0x92c   :  { %4009 = vtanh.f32 %v3896_v39  ;;  %v3125_v51 = vmul.f32 -1.442695, %v3896_v39 }
 0x92d   :  { %4011 = vtanh.f32 %v3895_v40 }
 0x92e   :  { %v3472_v41 = vpop.f32.mrb[6].mxu1 }
 0x92f   :  { %v1020_v42 = vpop.f32.mrb[7].mxu1  ;;  %v1026_v44 = vadd.f32 %v3472_v41, %v4413_v18 }
 0x930   :  { %v1021_v43 = vadd.f32 %v4413_v18, %v1020_v42 }
 0x931   :  { %v3122_v54 = vmul.f32 -1.442695, %v1026_v44 }
 0x932   :  { %4013 = vtanh.f32 %v1021_v43  ;;  %v3121_v53 = vmul.f32 -1.442695, %v1021_v43 }
 0x933   :  { %4015 = vtanh.f32 %v1026_v44 }
 0x934   :  { %4017 = vpow2.f32 %v3125_v51 }
 0x935   :  { %4019 = vpow2.f32 %v3126_v52 }
 0x936   :  { %v4010_v45 = vpop.eup %4009  ;;  %4021 = vpow2.f32 %v3121_v53 }
 0x937   :  { %1176 = vrot.lane.b32.xlu1 %v4010_v45, %s4188_s13  ;;  %v4012_v47 = vpop.eup %4011  ;;  %4023 = vpow2.f32 %v3122_v54 }
 0x93b   :  { %1178 = vrot.lane.b32.xlu1 %v4012_v47, %s4188_s13 }
 0x93c   :  { %v4014_v48 = vpop.eup %4013 }
 0x93d   :  { %1047 = vrot.lane.b32.xlu0 %v4014_v48, %s4188_s13  ;;  %v4016_v50 = vpop.eup %4015 }
 0x93e   :  { %v4018_v56 = vpop.eup %4017 }
 0x93f   :  { %v1164_v57 = vadd.f32 1.0, %v4018_v56  ;;  %v4020_v59 = vpop.eup %4019 }
 0x940   :  { %v4022_v60 = vpop.eup %4021  ;;  %v1165_v62 = vadd.f32 1.0, %v4020_v59 }
 0x941   :  { %1049 = vrot.lane.b32.xlu0 %v4016_v50, %s4188_s13  ;;  %4025 = vrcp.f32 %v1164_v57  ;;  %v1035_v63 = vadd.f32 1.0, %v4022_v60  ;;  %v4024_v1 = vpop.eup %4023 }
 0x942   :  { %4027 = vrcp.f32 %v1165_v62  ;;  %v1036_v3 = vadd.f32 1.0, %v4024_v1 }
 0x943   :  { %4029 = vrcp.f32 %v1035_v63 }
 0x944   :  { %4031 = vrcp.f32 %v1036_v3 }
 0x94b   :  { %v4026_v5 = vpop.eup %4025 }
 0x94c   :  { %v4028_v7 = vpop.eup %4027  ;;  %v1172_v0 = vmul.f32 %v4026_v5, %v4480_v9 }
 0x94d   :  { %v4030_v13 = vpop.eup %4029  ;;  %v1173_v23 = vmul.f32 %v4028_v7, %v4485_v14 }
 0x94e   :  { %v4032_v17 = vpop.eup %4031  ;;  %v1043_v25 = vmul.f32 %v4030_v13, %v4487_v16 }
 0x94f   :  { %v1044_v9 = vmul.f32 %v4032_v17, %v4492_v19 }
 0x9a9   :  { %v1177_v6 = vpop.permute.xlu1 %1176 }
 0x9aa   :  { %v1182_v38 = vmul.f32 %v4026_v5, %v1177_v6 }
 0x9ac   :  { %1186 = vrot.lane.b32.xlu1 %v1182_v38, %s4189_s14 }
 0x9ad   :  { %v1179_v10 = vpop.permute.xlu1 %1178 }
 0x9ae   :  { %v1183_v11 = vmul.f32 %v4028_v7, %v1179_v10 }
 0x9af   :  { %v1048_v15 = vpop.permute.xlu0 %1047 }
 0x9b0   :  { %1188 = vrot.lane.b32.xlu1 %v1183_v11, %s4189_s14  ;;  %v1053_v58 = vmul.f32 %v4030_v13, %v1048_v15 }
 0x9b2   :  { %1057 = vrot.lane.b32.xlu0 %v1053_v58, %s4189_s14 }
 0x9b3   :  { %v1050_v20 = vpop.permute.xlu0 %1049 }
 0x9b4   :  { %v1054_v61 = vmul.f32 %v4032_v17, %v1050_v20 }
 0x9b6   :  { %1059 = vrot.lane.b32.xlu0 %v1054_v61, %s4189_s14 }
 0xa1e   :  { %v1187_v21 = vpop.permute.xlu1 %1186 }
 0xa1f   :  { %v4534_v22 = vadd.f32 %v1187_v21, %v1172_v0 }
 0xa21   :  { %4033 = vtanh.f32 %v4534_v22 }
 0xa22   :  { %v1189_v35 = vpop.permute.xlu1 %1188 }
 0xa23   :  { %v4538_v24 = vadd.f32 %v1189_v35, %v1173_v23 }
 0xa24   :  { %v1058_v26 = vpop.permute.xlu0 %1057 }
 0xa25   :  { %4035 = vtanh.f32 %v4538_v24  ;;  %v4542_v27 = vadd.f32 %v1058_v26, %v1043_v25 }
 0xa27   :  { %4037 = vtanh.f32 %v4542_v27 }
 0xa28   :  { %v1060_v28 = vpop.permute.xlu0 %1059 }
 0xa29   :  { %v4546_v29 = vadd.f32 %v1060_v28, %v1044_v9 }
 0xa2b   :  { %v4034_v30 = vpop.eup %4033  ;;  %4039 = vtanh.f32 %v4546_v29 }
 0xa2c   :  { %1198 = vrot.lane.b32.xlu1 %v4034_v30, %s4188_s13 }
 0xa2f   :  { %v4036_v14 = vpop.eup %4035 }
 0xa30   :  { %1200 = vrot.lane.b32.xlu1 %v4036_v14, %s4188_s13 }
 0xa31   :  { %v4038_v16 = vpop.eup %4037 }
 0xa32   :  { %1069 = vrot.lane.b32.xlu0 %v4038_v16, %s4188_s13 }
 0xa35   :  { %v4040_v31 = vpop.eup %4039 }
 0xa36   :  { %1071 = vrot.lane.b32.xlu0 %v4040_v31, %s4188_s13 }
 0xa9e   :  { %v1199_v32 = vpop.permute.xlu1 %1198 }
 0xa9f   :  { %v1204_v33 = vmul.f32 %v4026_v5, %v1199_v32 }
 0xaa1   :  { %1208 = vrot.lane.b32.xlu0 %v1204_v33, %s4189_s14 }
 0xaa2   :  { %v1201_v19 = vpop.permute.xlu1 %1200 }
 0xaa3   :  { %v1205_v34 = vmul.f32 %v4028_v7, %v1201_v19 }
 0xaa4   :  { %v1070_v36 = vpop.permute.xlu0 %1069 }
 0xaa5   :  { %1210 = vrot.lane.b32.xlu0 %v1205_v34, %s4189_s14  ;;  %v1075_v37 = vmul.f32 %v4030_v13, %v1070_v36 }
 0xaa7   :  { %1216 = vrot.lane.b32.xlu1 %v1075_v37, %s4188_s13 }
 0xaa8   :  { %v1072_v39 = vpop.permute.xlu0 %1071 }
 0xaa9   :  { %v1076_v40 = vmul.f32 %v4032_v17, %v1072_v39 }
 0xaab   :  { %1218 = vrot.lane.b32.xlu1 %v1076_v40, %s4188_s13 }
 0xb13   :  { %v1209_v41 = vpop.permute.xlu0 %1208 }
 0xb14   :  { %3511 = vmatprep.mubr.msk.f32.mxu0 %vm252_vm1, %v1209_v41 }
 0xb17   :  { %v1211_v42 = vpop.permute.xlu0 %1210 }
 0xb18   :  { %3512 = vmatmul.mubr.msk.f32.vlgmr.msra.gmra.mrb[8].mxu0 %vm252_vm1, %v1211_v42 }
 0xb19   :  { %3794 = vmatpush3.bf16.msra.mxu0 %v4237_v4  ;;  %v1217_v43 = vpop.permute.xlu1 %1216 }
 0xb1a   :  { %3796 = vmatprep.subr.bf16.mxu0 %v4249_v8  ;;  %v1222_v44 = vsel %vm252_vm1, %v1209_v41, %v1217_v43 }
 0xb1b   :  { %3500 = vmatprep.mubr.msk.f32.mxu1 %vm395_vm2, %v1222_v44 }
 0xb1d   :  { %3798 = vmatpush3.bf16.msra.mxu0 %v4249_v8  ;;  %v1219_v45 = vpop.permute.xlu1 %1218 }
 0xb1e   :  { %3800 = vmatprep.subr.bf16.mxu0 %v4313_v46  ;;  %v1223_v47 = vsel %vm252_vm1, %v1211_v42, %v1219_v45 }
 0xb1f   :  { %3501 = vmatmul.mubr.msk.f32.vlgmr.msra.gmra.mrb[8].mxu1 %vm395_vm2, %v1223_v47 }
 0xb20   :  { %3778 = vmatpush3.bf16.msra.mxu1 %v4313_v46 }
 0xb21   :  { %3780 = vmatprep.subr.bf16.mxu1 %v4321_v49 }
 0xb24   :  { %3782 = vmatpush3.bf16.msra.mxu1 %v4321_v49 }
 0xb25   :  { %3784 = vmatprep.subr.bf16.mxu1 %v4341_v55 }
 0xb28   :  { %3786 = vmatpush3.bf16.msra.mxu1 %v4341_v55 }
 0xb29   :  { %3788 = vmatprep.subr.bf16.mxu1 %v4383_v2 }
 0xb2c   :  { %3790 = vmatpush3.bf16.msra.mxu1 %v4383_v2 }
 0xb2d   :  { %3824 = vmatprep.subr.bf16.mxu1 %v4313_v46 }
 0xbeb   :  { %v3513_v48 = vpop.f32.mrb[8].mxu0 }
 0xbec   :  { %v1423_v50 = vpop.f32.mrb[9].mxu0  ;;  %v3897_v52 = vadd.f32 %v3513_v48, %v4267_v12 }
 0xbed   :  { %v3898_v51 = vadd.f32 %v4267_v12, %v1423_v50 }
 0xbee   :  { %v3134_v1 = vmul.f32 -1.442695, %v3897_v52 }
 0xbef   :  { %4041 = vtanh.f32 %v3898_v51  ;;  %v3133_v63 = vmul.f32 -1.442695, %v3898_v51 }
 0xbf0   :  { %4043 = vtanh.f32 %v3897_v52 }
 0xbf2   :  { %v3502_v53 = vpop.f32.mrb[8].mxu1 }
 0xbf3   :  { %v1296_v54 = vpop.f32.mrb[9].mxu1  ;;  %v1302_v57 = vadd.f32 %v3502_v53, %v4413_v18 }
 0xbf4   :  { %v1297_v56 = vadd.f32 %v4413_v18, %v1296_v54 }
 0xbf5   :  { %v3130_v5 = vmul.f32 -1.442695, %v1302_v57 }
 0xbf6   :  { %4045 = vtanh.f32 %v1297_v56  ;;  %v3129_v3 = vmul.f32 -1.442695, %v1297_v56 }
 0xbf7   :  { %4047 = vtanh.f32 %v1302_v57 }
 0xbf8   :  { %4049 = vpow2.f32 %v3133_v63 }
 0xbf9   :  { %v4042_v59 = vpop.eup %4041  ;;  %4051 = vpow2.f32 %v3134_v1 }
 0xbfa   :  { %1452 = vrot.lane.b32.xlu1 %v4042_v59, %s4188_s13  ;;  %v4044_v60 = vpop.eup %4043  ;;  %4053 = vpow2.f32 %v3129_v3 }
 0xbfb   :  { %4055 = vpow2.f32 %v3130_v5 }
 0xbfe   :  { %1454 = vrot.lane.b32.xlu1 %v4044_v60, %s4188_s13 }
 0xc00   :  { %v4046_v62 = vpop.eup %4045 }
 0xc01   :  { %1323 = vrot.lane.b32.xlu0 %v4046_v62, %s4188_s13  ;;  %v4048_v12 = vpop.eup %4047 }
 0xc02   :  { %v4050_v6 = vpop.eup %4049 }
 0xc03   :  { %v1440_v38 = vadd.f32 1.0, %v4050_v6  ;;  %v4052_v7 = vpop.eup %4051 }
 0xc04   :  { %v1441_v10 = vadd.f32 1.0, %v4052_v7  ;;  %v4054_v11 = vpop.eup %4053 }
 0xc05   :  { %1325 = vrot.lane.b32.xlu0 %v4048_v12, %s4188_s13  ;;  %4057 = vrcp.f32 %v1440_v38  ;;  %v1311_v13 = vadd.f32 1.0, %v4054_v11  ;;  %v4056_v15 = vpop.eup %4055  ;;  %v4636_v12 = vld [vmem:[%s4887_s3 + $0x68] ss:$0 sm:$0xff] }
 0xc06   :  { %4059 = vrcp.f32 %v1441_v10  ;;  %v1312_v58 = vadd.f32 1.0, %v4056_v15 }
 0xc07   :  { %4061 = vrcp.f32 %v1311_v13 }
 0xc08   :  { %4063 = vrcp.f32 %v1312_v58 }
 0xc0f   :  { %v4058_v17 = vpop.eup %4057 }
 0xc10   :  { %v4060_v0 = vpop.eup %4059  ;;  %v1448_v14 = vmul.f32 %v4058_v17, %v4534_v22 }
 0xc11   :  { %v4062_v35 = vpop.eup %4061  ;;  %v1449_v32 = vmul.f32 %v4060_v0, %v4538_v24 }
 0xc12   :  { %v4064_v9 = vpop.eup %4063  ;;  %v1319_v34 = vmul.f32 %v4062_v35, %v4542_v27 }
 0xc13   :  { %v1320_v22 = vmul.f32 %v4064_v9, %v4546_v29 }
 0xc6c   :  { %v1453_v20 = vpop.permute.xlu1 %1452 }
 0xc6d   :  { %v1458_v61 = vmul.f32 %v4058_v17, %v1453_v20 }
 0xc6f   :  { %1462 = vrot.lane.b32.xlu1 %v1458_v61, %s4189_s14 }
 0xc70   :  { %v1455_v21 = vpop.permute.xlu1 %1454 }
 0xc71   :  { %v1459_v23 = vmul.f32 %v4060_v0, %v1455_v21 }
 0xc73   :  { %1464 = vrot.lane.b32.xlu1 %v1459_v23, %s4189_s14  ;;  %v1324_v25 = vpop.permute.xlu0 %1323 }
 0xc74   :  { %v1329_v26 = vmul.f32 %v4062_v35, %v1324_v25 }
 0xc76   :  { %1333 = vrot.lane.b32.xlu0 %v1329_v26, %s4189_s14 }
 0xc77   :  { %v1326_v28 = vpop.permute.xlu0 %1325 }
 0xc78   :  { %v1330_v30 = vmul.f32 %v4064_v9, %v1326_v28 }
 0xc7a   :  { %1335 = vrot.lane.b32.xlu0 %v1330_v30, %s4189_s14 }
 0xce1   :  { %v1463_v16 = vpop.permute.xlu1 %1462 }
 0xce2   :  { %v4588_v31 = vadd.f32 %v1463_v16, %v1448_v14 }
 0xce4   :  { %4065 = vtanh.f32 %v4588_v31 }
 0xce5   :  { %v1465_v33 = vpop.permute.xlu1 %1464 }
 0xce6   :  { %v4592_v19 = vadd.f32 %v1465_v33, %v1449_v32 }
 0xce8   :  { %4067 = vtanh.f32 %v4592_v19  ;;  %v1334_v36 = vpop.permute.xlu0 %1333 }
 0xce9   :  { %v4596_v37 = vadd.f32 %v1334_v36, %v1319_v34 }
 0xceb   :  { %4069 = vtanh.f32 %v4596_v37 }
 0xcec   :  { %v1336_v39 = vpop.permute.xlu0 %1335 }
 0xced   :  { %v4600_v41 = vadd.f32 %v1336_v39, %v1320_v22 }
 0xcee   :  { %v4066_v40 = vpop.eup %4065 }
 0xcef   :  { %1474 = vrot.lane.b32.xlu1 %v4066_v40, %s4188_s13  ;;  %4071 = vtanh.f32 %v4600_v41 }
 0xcf2   :  { %v4068_v24 = vpop.eup %4067 }
 0xcf3   :  { %1476 = vrot.lane.b32.xlu1 %v4068_v24, %s4188_s13 }
 0xcf5   :  { %v4070_v42 = vpop.eup %4069 }
 0xcf6   :  { %1345 = vrot.lane.b32.xlu0 %v4070_v42, %s4188_s13 }
 0xcf9   :  { %v4072_v27 = vpop.eup %4071 }
 0xcfa   :  { %1347 = vrot.lane.b32.xlu0 %v4072_v27, %s4188_s13 }
 0xd61   :  { %v1475_v43 = vpop.permute.xlu1 %1474 }
 0xd62   :  { %v1480_v44 = vmul.f32 %v4058_v17, %v1475_v43 }
 0xd64   :  { %1484 = vrot.lane.b32.xlu0 %v1480_v44, %s4189_s14 }
 0xd65   :  { %v1477_v29 = vpop.permute.xlu1 %1476 }
 0xd66   :  { %v1481_v45 = vmul.f32 %v4060_v0, %v1477_v29 }
 0xd68   :  { %1486 = vrot.lane.b32.xlu0 %v1481_v45, %s4189_s14  ;;  %v1346_v47 = vpop.permute.xlu0 %1345 }
 0xd69   :  { %v1351_v48 = vmul.f32 %v4062_v35, %v1346_v47 }
 0xd6b   :  { %1492 = vrot.lane.b32.xlu1 %v1351_v48, %s4188_s13 }
 0xd6c   :  { %v1348_v50 = vpop.permute.xlu0 %1347 }
 0xd6d   :  { %v1352_v51 = vmul.f32 %v4064_v9, %v1348_v50 }
 0xd6f   :  { %1494 = vrot.lane.b32.xlu1 %v1352_v51, %s4188_s13 }
 0xdd6   :  { %v1485_v52 = vpop.permute.xlu0 %1484 }
 0xdd7   :  { %3541 = vmatprep.mubr.msk.f32.mxu0 %vm252_vm1, %v1485_v52 }
 0xdda   :  { %v1487_v53 = vpop.permute.xlu0 %1486 }
 0xddb   :  { %3542 = vmatmul.mubr.msk.f32.vlgmr.msra.gmra.mrb[10].mxu0 %vm252_vm1, %v1487_v53 }
 0xddc   :  { %3802 = vmatpush3.bf16.msra.mxu0 %v4313_v46 }
 0xddd   :  { %3804 = vmatprep.subr.bf16.mxu0 %v4321_v49  ;;  %v1493_v54 = vpop.permute.xlu1 %1492 }
 0xdde   :  { %v1498_v56 = vsel %vm252_vm1, %v1485_v52, %v1493_v54 }
 0xddf   :  { %3530 = vmatprep.mubr.msk.f32.mxu1 %vm395_vm2, %v1498_v56 }
 0xde0   :  { %3806 = vmatpush3.bf16.msra.mxu0 %v4321_v49 }
 0xde1   :  { %3808 = vmatprep.subr.bf16.mxu0 %v4341_v55  ;;  %v1495_v57 = vpop.permute.xlu1 %1494 }
 0xde2   :  { %v1499_v59 = vsel %vm252_vm1, %v1487_v53, %v1495_v57 }
 0xde3   :  { %3531 = vmatmul.mubr.msk.f32.vlgmr.msra.gmra.mrb[10].mxu1 %vm395_vm2, %v1499_v59 }
 0xde4   :  { %3810 = vmatpush3.bf16.msra.mxu0 %v4341_v55  ;;  %3826 = vmatpush3.bf16.msra.mxu1 %v4313_v46 }
 0xde5   :  { %3812 = vmatprep.subr.bf16.mxu0 %v4383_v2  ;;  %3828 = vmatprep.subr.bf16.mxu1 %v4321_v49 }
 0xde8   :  { %3814 = vmatpush3.bf16.msra.mxu0 %v4383_v2  ;;  %3830 = vmatpush3.bf16.msra.mxu1 %v4321_v49 }
 0xde9   :  { %3816 = vmatprep.subr.bf16.mxu0 %v4237_v4  ;;  %3832 = vmatprep.subr.bf16.mxu1 %v4341_v55 }
 0xdec   :  { %3834 = vmatpush3.bf16.msra.mxu1 %v4341_v55 }
 0xded   :  { %3836 = vmatprep.subr.bf16.mxu1 %v4383_v2 }
 0xdf0   :  { %3838 = vmatpush3.bf16.msra.mxu1 %v4383_v2 }
 0xdf1   :  { %3848 = vmatprep.subr.bf16.mxu1 %v4313_v46 }
 0xeae   :  { %v3543_v60 = vpop.f32.mrb[10].mxu0 }
 0xeaf   :  { %v1699_v62 = vpop.f32.mrb[11].mxu0  ;;  %v3899_v1 = vadd.f32 %v4636_v12, %v3543_v60 }
 0xeb0   :  { %v3900_v63 = vadd.f32 %v4636_v12, %v1699_v62 }
 0xeb1   :  { %v3142_v58 = vmul.f32 -1.442695, %v3899_v1 }
 0xeb2   :  { %4073 = vtanh.f32 %v3900_v63  ;;  %v3141_v15 = vmul.f32 -1.442695, %v3900_v63 }
 0xeb3   :  { %4075 = vtanh.f32 %v3899_v1 }
 0xeb6   :  { %v3532_v3 = vpop.f32.mrb[10].mxu1 }
 0xeb7   :  { %v1572_v5 = vpop.f32.mrb[11].mxu1  ;;  %v1578_v38 = vadd.f32 %v3532_v3, %v4413_v18 }
 0xeb8   :  { %v1573_v6 = vadd.f32 %v4413_v18, %v1572_v5 }
 0xeb9   :  { %v3138_v18 = vmul.f32 -1.442695, %v1578_v38 }
 0xeba   :  { %4077 = vtanh.f32 %v1573_v6  ;;  %v3137_v17 = vmul.f32 -1.442695, %v1573_v6 }
 0xebb   :  { %4079 = vtanh.f32 %v1578_v38 }
 0xebc   :  { %v4074_v7 = vpop.eup %4073  ;;  %4081 = vpow2.f32 %v3141_v15 }
 0xebd   :  { %1728 = vrot.lane.b32.xlu1 %v4074_v7, %s4188_s13  ;;  %v4076_v10 = vpop.eup %4075  ;;  %4083 = vpow2.f32 %v3142_v58 }
 0xebe   :  { %4085 = vpow2.f32 %v3137_v17 }
 0xebf   :  { %4087 = vpow2.f32 %v3138_v18 }
 0xec1   :  { %1730 = vrot.lane.b32.xlu1 %v4076_v10, %s4188_s13 }
 0xec4   :  { %v4078_v11 = vpop.eup %4077 }
 0xec5   :  { %1599 = vrot.lane.b32.xlu0 %v4078_v11, %s4188_s13  ;;  %v4080_v13 = vpop.eup %4079 }
 0xec6   :  { %v4082_v20 = vpop.eup %4081 }
 0xec7   :  { %v1716_v61 = vadd.f32 1.0, %v4082_v20  ;;  %v4084_v0 = vpop.eup %4083 }
 0xec8   :  { %v1717_v21 = vadd.f32 1.0, %v4084_v0  ;;  %v4086_v23 = vpop.eup %4085 }
 0xec9   :  { %1601 = vrot.lane.b32.xlu0 %v4080_v13, %s4188_s13  ;;  %4089 = vrcp.f32 %v1716_v61  ;;  %v1587_v35 = vadd.f32 1.0, %v4086_v23  ;;  %v4088_v25 = vpop.eup %4087  ;;  %v4690_v13 = vld [vmem:[%s4887_s3 + $0x69] ss:$0 sm:$0xff] }
 0xeca   :  { %4091 = vrcp.f32 %v1717_v21  ;;  %v1588_v26 = vadd.f32 1.0, %v4088_v25 }
 0xecb   :  { %4093 = vrcp.f32 %v1587_v35 }
 0xecc   :  { %4095 = vrcp.f32 %v1588_v26 }
 0xed3   :  { %v4090_v9 = vpop.eup %4089 }
 0xed4   :  { %v4092_v14 = vpop.eup %4091  ;;  %v1724_v24 = vmul.f32 %v4090_v9, %v4588_v31 }
 0xed5   :  { %v4094_v33 = vpop.eup %4093  ;;  %v1725_v43 = vmul.f32 %v4092_v14, %v4592_v19 }
 0xed6   :  { %v4096_v22 = vpop.eup %4095  ;;  %v1595_v45 = vmul.f32 %v4094_v33, %v4596_v37 }
 0xed7   :  { %v1596_v31 = vmul.f32 %v4096_v22, %v4600_v41 }
 0xf2f   :  { %v1729_v28 = vpop.permute.xlu1 %1728 }
 0xf30   :  { %v1734_v30 = vmul.f32 %v4090_v9, %v1729_v28 }
 0xf32   :  { %1738 = vrot.lane.b32.xlu1 %v1734_v30, %s4189_s14 }
 0xf33   :  { %v1731_v16 = vpop.permute.xlu1 %1730 }
 0xf34   :  { %v1735_v32 = vmul.f32 %v4092_v14, %v1731_v16 }
 0xf36   :  { %1740 = vrot.lane.b32.xlu1 %v1735_v32, %s4189_s14 }
 0xf37   :  { %v1600_v34 = vpop.permute.xlu0 %1599 }
 0xf38   :  { %v1605_v36 = vmul.f32 %v4094_v33, %v1600_v34 }
 0xf3a   :  { %1609 = vrot.lane.b32.xlu0 %v1605_v36, %s4189_s14 }
 0xf3b   :  { %v1602_v39 = vpop.permute.xlu0 %1601 }
 0xf3c   :  { %v1606_v40 = vmul.f32 %v4096_v22, %v1602_v39 }
 0xf3e   :  { %1611 = vrot.lane.b32.xlu0 %v1606_v40, %s4189_s14 }
 0xfa4   :  { %v1739_v42 = vpop.permute.xlu1 %1738 }
 0xfa5   :  { %v4651_v27 = vadd.f32 %v1739_v42, %v1724_v24 }
 0xfa7   :  { %4097 = vtanh.f32 %v4651_v27 }
 0xfa8   :  { %v1741_v44 = vpop.permute.xlu1 %1740 }
 0xfa9   :  { %v4655_v29 = vadd.f32 %v1741_v44, %v1725_v43 }
 0xfab   :  { %4099 = vtanh.f32 %v4655_v29 }
 0xfac   :  { %v1610_v47 = vpop.permute.xlu0 %1609 }
 0xfad   :  { %v4659_v48 = vadd.f32 %v1610_v47, %v1595_v45 }
 0xfaf   :  { %4101 = vtanh.f32 %v4659_v48 }
 0xfb0   :  { %v1612_v51 = vpop.permute.xlu0 %1611 }
 0xfb1   :  { %v4098_v50 = vpop.eup %4097  ;;  %v4663_v52 = vadd.f32 %v1612_v51, %v1596_v31 }
 0xfb2   :  { %1750 = vrot.lane.b32.xlu1 %v4098_v50, %s4188_s13 }
 0xfb3   :  { %4103 = vtanh.f32 %v4663_v52 }
 0xfb5   :  { %v4100_v19 = vpop.eup %4099 }
 0xfb6   :  { %1752 = vrot.lane.b32.xlu1 %v4100_v19, %s4188_s13 }
 0xfb9   :  { %v4102_v53 = vpop.eup %4101 }
 0xfba   :  { %1621 = vrot.lane.b32.xlu0 %v4102_v53, %s4188_s13 }
 0xfbd   :  { %v4104_v37 = vpop.eup %4103 }
 0xfbe   :  { %1623 = vrot.lane.b32.xlu0 %v4104_v37, %s4188_s13 }
0x1024   :  { %v1751_v54 = vpop.permute.xlu1 %1750 }
0x1025   :  { %v1756_v56 = vmul.f32 %v4090_v9, %v1751_v54 }
0x1027   :  { %1760 = vrot.lane.b32.xlu0 %v1756_v56, %s4189_s14 }
0x1028   :  { %v1753_v41 = vpop.permute.xlu1 %1752 }
0x1029   :  { %v1757_v57 = vmul.f32 %v4092_v14, %v1753_v41 }
0x102b   :  { %1762 = vrot.lane.b32.xlu0 %v1757_v57, %s4189_s14 }
0x102c   :  { %v1622_v59 = vpop.permute.xlu0 %1621 }
0x102d   :  { %v1627_v60 = vmul.f32 %v4094_v33, %v1622_v59 }
0x102f   :  { %1768 = vrot.lane.b32.xlu1 %v1627_v60, %s4188_s13 }
0x1030   :  { %v1624_v62 = vpop.permute.xlu0 %1623 }
0x1031   :  { %v1628_v63 = vmul.f32 %v4096_v22, %v1624_v62 }
0x1033   :  { %1770 = vrot.lane.b32.xlu1 %v1628_v63, %s4188_s13 }
0x1099   :  { %v1761_v1 = vpop.permute.xlu0 %1760 }
0x109d   :  { %v1763_v6 = vpop.permute.xlu0 %1762 }
0x10a1   :  { %v1769_v3 = vpop.permute.xlu1 %1768 }
0x10a2   :  { %v1774_v5 = vsel %vm252_vm1, %v1761_v1, %v1769_v3 }
0x10a3   :  { %3560 = vmatprep.mubr.msk.f32.mxu0 %vm395_vm2, %v1774_v5 }
0x10a5   :  { %v1771_v38 = vpop.permute.xlu1 %1770 }
0x10a6   :  { %v1775_v7 = vsel %vm252_vm1, %v1763_v6, %v1771_v38 }
0x10a7   :  { %3561 = vmatmul.mubr.msk.f32.vlgmr.msra.gmra.mrb[16].mxu0 %vm395_vm2, %v1775_v7 }
0x10a8   :  { %3818 = vmatpush3.bf16.msra.mxu0 %v4237_v4  ;;  %3571 = vmatprep.mubr.msk.f32.mxu0 %vm252_vm1, %v1761_v1 }
0x10a9   :  { %3820 = vmatprep.subr.bf16.mxu0 %v4249_v8 }
0x10ac   :  { %3822 = vmatpush3.bf16.msra.mxu0 %v4249_v8 }
0x10ad   :  { %3840 = vmatprep.subr.bf16.mxu0 %v4237_v4 }
0x10af   :  { %3572 = vmatmul.mubr.msk.f32.vlgmr.msra.gmra.mrb[12].mxu0 %vm252_vm1, %v1763_v6 }
0x10b0   :  { %3842 = vmatpush3.bf16.msra.mxu0 %v4237_v4 }
0x10b1   :  { %3844 = vmatprep.subr.bf16.mxu0 %v4249_v8 }
0x10b4   :  { %3846 = vmatpush3.bf16.msra.mxu0 %v4249_v8 }
0x117a   :  { %v3562_v10 = vpop.f32.mrb[16].mxu0 }
0x117b   :  { %v1848_v11 = vpop.f32.mrb[17].mxu0  ;;  %v1854_v58 = vadd.f32 %v4690_v13, %v3562_v10 }
0x117c   :  { %v1849_v15 = vadd.f32 %v4690_v13, %v1848_v11 }
0x117d   :  { %v3146_v35 = vmul.f32 -1.442695, %v1854_v58 }
0x117e   :  { %4105 = vtanh.f32 %v1849_v15  ;;  %v3145_v23 = vmul.f32 -1.442695, %v1849_v15 }
0x117f   :  { %4107 = vtanh.f32 %v1854_v58 }
0x1182   :  { %v3573_v17 = vpop.f32.mrb[12].mxu0 }
0x1183   :  { %v1975_v18 = vpop.f32.mrb[13].mxu0  ;;  %v3901_v20 = vadd.f32 %v4636_v12, %v3573_v17 }
0x1184   :  { %v3902_v4 = vadd.f32 %v4636_v12, %v1975_v18 }
0x1185   :  { %v3150_v26 = vmul.f32 -1.442695, %v3901_v20 }
0x1186   :  { %4109 = vtanh.f32 %v3902_v4  ;;  %v3149_v25 = vmul.f32 -1.442695, %v3902_v4 }
0x1187   :  { %4111 = vtanh.f32 %v3901_v20 }
0x1188   :  { %v4106_v8 = vpop.eup %4105  ;;  %4113 = vpow2.f32 %v3145_v23 }
0x1189   :  { %1875 = vrot.lane.b32.xlu0 %v4106_v8, %s4188_s13  ;;  %v4108_v61 = vpop.eup %4107  ;;  %4115 = vpow2.f32 %v3146_v35  ;;  %v4744_v8 = vld [vmem:[%s4889_s1] sm:$0xff] }
0x118a   :  { %4117 = vpow2.f32 %v3149_v25 }
0x118b   :  { %4119 = vpow2.f32 %v3150_v26 }
0x118d   :  { %1877 = vrot.lane.b32.xlu0 %v4108_v61, %s4188_s13 }
0x1190   :  { %v4110_v0 = vpop.eup %4109 }
0x1191   :  { %2004 = vrot.lane.b32.xlu1 %v4110_v0, %s4188_s13  ;;  %v4112_v21 = vpop.eup %4111 }
0x1192   :  { %v4114_v9 = vpop.eup %4113 }
0x1193   :  { %v1863_v28 = vadd.f32 1.0, %v4114_v9  ;;  %v4116_v30 = vpop.eup %4115 }
0x1194   :  { %v1864_v14 = vadd.f32 1.0, %v4116_v30  ;;  %v4118_v16 = vpop.eup %4117 }
0x1195   :  { %2006 = vrot.lane.b32.xlu1 %v4112_v21, %s4188_s13  ;;  %4121 = vrcp.f32 %v1863_v28  ;;  %v1992_v32 = vadd.f32 1.0, %v4118_v16  ;;  %v4120_v33 = vpop.eup %4119 }
0x1196   :  { %4123 = vrcp.f32 %v1864_v14  ;;  %v1993_v34 = vadd.f32 1.0, %v4120_v33 }
0x1197   :  { %4125 = vrcp.f32 %v1992_v32 }
0x1198   :  { %4127 = vrcp.f32 %v1993_v34 }
0x119f   :  { %v4122_v36 = vpop.eup %4121 }
0x11a0   :  { %v4124_v40 = vpop.eup %4123  ;;  %v1871_v51 = vmul.f32 %v4122_v36, %v4659_v48 }
0x11a1   :  { %v4126_v43 = vpop.eup %4125  ;;  %v1872_v37 = vmul.f32 %v4124_v40, %v4663_v52 }
0x11a2   :  { %v4128_v47 = vpop.eup %4127  ;;  %v2000_v41 = vmul.f32 %v4126_v43, %v4651_v27 }
0x11a3   :  { %v2001_v48 = vmul.f32 %v4128_v47, %v4655_v29 }
0x11fb   :  { %v1876_v22 = vpop.permute.xlu0 %1875 }
0x11fc   :  { %v1881_v39 = vmul.f32 %v4122_v36, %v1876_v22 }
0x11fe   :  { %1885 = vrot.lane.b32.xlu0 %v1881_v39, %s4189_s14 }
0x11ff   :  { %v1878_v24 = vpop.permute.xlu0 %1877 }
0x1200   :  { %v1882_v42 = vmul.f32 %v4124_v40, %v1878_v24 }
0x1202   :  { %1887 = vrot.lane.b32.xlu0 %v1882_v42, %s4189_s14 }
0x1203   :  { %v2005_v44 = vpop.permute.xlu1 %2004 }
0x1204   :  { %v2010_v45 = vmul.f32 %v4126_v43, %v2005_v44 }
0x1206   :  { %2014 = vrot.lane.b32.xlu1 %v2010_v45, %s4189_s14 }
0x1207   :  { %v2007_v31 = vpop.permute.xlu1 %2006 }
0x1208   :  { %v2011_v50 = vmul.f32 %v4128_v47, %v2007_v31 }
0x120a   :  { %2016 = vrot.lane.b32.xlu1 %v2011_v50, %s4189_s14 }
0x1270   :  { %v1886_v19 = vpop.permute.xlu0 %1885 }
0x1271   :  { %v4705_v53 = vadd.f32 %v1886_v19, %v1871_v51 }
0x1273   :  { %4129 = vtanh.f32 %v4705_v53 }
0x1274   :  { %v1888_v54 = vpop.permute.xlu0 %1887 }
0x1275   :  { %v4709_v56 = vadd.f32 %v1888_v54, %v1872_v37 }
0x1277   :  { %4131 = vtanh.f32 %v4709_v56 }
0x1278   :  { %v2015_v57 = vpop.permute.xlu1 %2014 }
0x1279   :  { %v4713_v59 = vadd.f32 %v2015_v57, %v2000_v41 }
0x127b   :  { %4133 = vtanh.f32 %v4713_v59 }
0x127c   :  { %v2017_v60 = vpop.permute.xlu1 %2016 }
0x127d   :  { %v4130_v62 = vpop.eup %4129  ;;  %v4717_v63 = vadd.f32 %v2017_v60, %v2001_v48 }
0x127e   :  { %1897 = vrot.lane.b32.xlu0 %v4130_v62, %s4188_s13 }
0x127f   :  { %4135 = vtanh.f32 %v4717_v63 }
0x1281   :  { %v4132_v52 = vpop.eup %4131 }
0x1282   :  { %1899 = vrot.lane.b32.xlu0 %v4132_v52, %s4188_s13 }
0x1285   :  { %v4134_v1 = vpop.eup %4133 }
0x1286   :  { %2026 = vrot.lane.b32.xlu1 %v4134_v1, %s4188_s13 }
0x1289   :  { %v4136_v27 = vpop.eup %4135 }
0x128a   :  { %2028 = vrot.lane.b32.xlu1 %v4136_v27, %s4188_s13 }
0x12f0   :  { %v1898_v3 = vpop.permute.xlu0 %1897 }
0x12f1   :  { %v1903_v5 = vmul.f32 %v4122_v36, %v1898_v3 }
0x12f3   :  { %2044 = vrot.lane.b32.xlu1 %v1903_v5, %s4188_s13 }
0x12f4   :  { %v1900_v29 = vpop.permute.xlu0 %1899 }
0x12f5   :  { %v1904_v6 = vmul.f32 %v4124_v40, %v1900_v29 }
0x12f7   :  { %2046 = vrot.lane.b32.xlu1 %v1904_v6, %s4188_s13 }
0x12f8   :  { %v2027_v38 = vpop.permute.xlu1 %2026 }
0x12f9   :  { %v2032_v7 = vmul.f32 %v4126_v43, %v2027_v38 }
0x12fb   :  { %2036 = vrot.lane.b32.xlu0 %v2032_v7, %s4189_s14 }
0x12fc   :  { %v2029_v10 = vpop.permute.xlu1 %2028 }
0x12fd   :  { %v2033_v11 = vmul.f32 %v4128_v47, %v2029_v10 }
0x12ff   :  { %2038 = vrot.lane.b32.xlu0 %v2033_v11, %s4189_s14 }
0x1303   :  { %2484 = vrot.lane.b32.xlu0 %v4744_v8, %s4190_s21 }
0x1365   :  { %v2045_v15 = vpop.permute.xlu1 %2044 }
0x1369   :  { %v2047_v18 = vpop.permute.xlu1 %2046 }
0x136d   :  { %v2037_v58 = vpop.permute.xlu0 %2036 }
0x136e   :  { %v2050_v17 = vsel %vm252_vm1, %v2037_v58, %v2045_v15  ;;  %3601 = vmatprep.mubr.msk.f32.mxu0 %vm252_vm1, %v2037_v58 }
0x136f   :  { %3590 = vmatprep.mubr.msk.f32.mxu1 %vm395_vm2, %v2050_v17 }
0x1371   :  { %v2039_v4 = vpop.permute.xlu0 %2038 }
0x1372   :  { %v2051_v20 = vsel %vm252_vm1, %v2039_v4, %v2047_v18  ;;  %3602 = vmatmul.mubr.msk.f32.vlgmr.msra.gmra.mrb[14].mxu0 %vm252_vm1, %v2039_v4 }
0x1373   :  { %3591 = vmatmul.mubr.msk.f32.vlgmr.msra.gmra.mrb[12].mxu1 %vm395_vm2, %v2051_v20  ;;  %v2475_v20 = vld [vmem:[%s4890_s4 + $0x4] sm:$0xff] }
0x1374   :  { %3850 = vmatpush3.bf16.msra.mxu1 %v4313_v46  ;;  %v4750_v46 = vld [vmem:[%s4889_s1 + $0x8] sm:$0xff] }
0x1375   :  { %3852 = vmatprep.subr.bf16.mxu1 %v4321_v49  ;;  %2486 = vrot.lane.b32.xlu1 %v4750_v46, %s4190_s21 }
0x1378   :  { %3854 = vmatpush3.bf16.msra.mxu1 %v4321_v49  ;;  %v2474_v49 = vld [vmem:[%s4890_s4] sm:$0xf] }
0x1379   :  { %3856 = vmatprep.subr.bf16.mxu1 %v4341_v55  ;;  %3623 = vmatprep.subr.msk.mxu0 %vm2493_vm3, %v2474_v49 }
0x137a   :  { %3624 = vmatpush3.msk.msra.mxu0 %vm2493_vm3, %v2474_v49 }
0x137c   :  { %3858 = vmatpush3.bf16.msra.mxu1 %v4341_v55 }
0x137d   :  { %3860 = vmatprep.subr.bf16.mxu1 %v4383_v2 }
0x1380   :  { %3862 = vmatpush3.bf16.msra.mxu1 %v4383_v2  ;;  %v2485_v2 = vpop.permute.xlu0 %2484 }
0x1381   :  { %3625 = vmatprep.mubr.msk.f32.mxu0 %vm2488_vm4, %v2485_v2  ;;  %3635 = vmatprep.subr.mxu1 %v2475_v20 }
0x13e7   :  { %v2487_v23 = vpop.permute.xlu1 %2486 }
0x13e8   :  { %3626 = vmatmul.mubr.msk.f32.vlgmr.msra.gmra.mrb[18].mxu0 %vm2488_vm4, %v2487_v23 }
0x1445   :  { %v3603_v55 = vpop.f32.mrb[14].mxu0 }
0x1446   :  { %v3592_v61 = vpop.f32.mrb[12].mxu1  ;;  %v2251_v0 = vpop.f32.mrb[15].mxu0  ;;  %v3903_v26 = vadd.f32 %v4636_v12, %v3603_v55 }
0x1447   :  { %v2124_v21 = vpop.f32.mrb[13].mxu1  ;;  %v3904_v35 = vadd.f32 %v4636_v12, %v2251_v0  ;;  %v2130_v9 = vadd.f32 %v4690_v13, %v3592_v61 }
0x1448   :  { %v2125_v25 = vadd.f32 %v4690_v13, %v2124_v21  ;;  %v3158_v33 = vmul.f32 -1.442695, %v3903_v26 }
0x1449   :  { %4137 = vtanh.f32 %v3904_v35  ;;  %v3157_v32 = vmul.f32 -1.442695, %v3904_v35  ;;  %v3154_v34 = vmul.f32 -1.442695, %v2130_v9 }
0x144a   :  { %4139 = vtanh.f32 %v2125_v25  ;;  %v3153_v12 = vmul.f32 -1.442695, %v2125_v25 }
0x144b   :  { %4141 = vtanh.f32 %v3903_v26 }
0x144c   :  { %4143 = vtanh.f32 %v2130_v9  ;;  %v3166_v9 = vld [vmem:[%s4890_s4 + $0xc] ss:$0 sm:$0xff] }
0x144d   :  { %4145 = vpow2.f32 %v3157_v32 }
0x144e   :  { %4147 = vpow2.f32 %v3153_v12 }
0x144f   :  { %4149 = vpow2.f32 %v3158_v33 }
0x1450   :  { %4151 = vpow2.f32 %v3154_v34 }
0x1453   :  { %v4138_v28 = vpop.eup %4137 }
0x1454   :  { %2280 = vrot.lane.b32.xlu1 %v4138_v28, %s4188_s13  ;;  %v4140_v30 = vpop.eup %4139 }
0x1455   :  { %2151 = vrot.lane.b32.xlu0 %v4140_v30, %s4188_s13  ;;  %v4142_v14 = vpop.eup %4141 }
0x1456   :  { %v4144_v16 = vpop.eup %4143 }
0x1457   :  { %v4146_v36 = vpop.eup %4145 }
0x1458   :  { %2282 = vrot.lane.b32.xlu1 %v4142_v14, %s4188_s13  ;;  %v4148_v22 = vpop.eup %4147  ;;  %v2268_v39 = vadd.f32 1.0, %v4146_v36 }
0x1459   :  { %2153 = vrot.lane.b32.xlu0 %v4144_v16, %s4188_s13  ;;  %v4150_v40 = vpop.eup %4149  ;;  %v2139_v24 = vadd.f32 1.0, %v4148_v22 }
0x145a   :  { %v4152_v42 = vpop.eup %4151  ;;  %v2269_v43 = vadd.f32 1.0, %v4150_v40  ;;  %4153 = vrcp.f32 %v2268_v39 }
0x145b   :  { %v2140_v44 = vadd.f32 1.0, %v4152_v42  ;;  %4155 = vrcp.f32 %v2139_v24 }
0x145c   :  { %4157 = vrcp.f32 %v2269_v43 }
0x145d   :  { %4159 = vrcp.f32 %v2140_v44 }
0x1464   :  { %v4154_v45 = vpop.eup %4153 }
0x1465   :  { %v4156_v50 = vpop.eup %4155  ;;  %v2276_v27 = vmul.f32 %v4154_v45, %v4713_v59  ;;  %v2479_v59 = vld [vmem:[%s4891_s0 + $0x8] sm:$0xff] }
0x1466   :  { %v4158_v37 = vpop.eup %4157  ;;  %v2147_v29 = vmul.f32 %v4156_v50, %v4705_v53  ;;  %v2478_v53 = vld [vmem:[%s4891_s0] sm:$0xff] }
0x1467   :  { %v4160_v57 = vpop.eup %4159  ;;  %v2277_v7 = vmul.f32 %v4158_v37, %v4717_v63  ;;  %3632 = vmatprep.mubr.msk.f32.mxu0 %vm2576_vm5, %v2478_v53 }
0x1468   :  { %v2148_v15 = vmul.f32 %v4160_v57, %v4709_v56 }
0x14bb   :  { %v3627_v62 = vpop.f32.mrb[18].mxu0 }
0x14bc   :  { %v2563_v52 = vpop.f32.mrb[19].mxu0 }
0x14bd   :  { %v3863_v1 = vpack.c.bf16 %v3627_v62, %v2563_v52 }
0x14bf   :  { %3864 = vmatprep.subr.bf16.mxu0 %v3863_v1 }
0x14c0   :  { %3866 = vmatpush3.bf16.msra.mxu0 %v3863_v1 }
0x14c3   :  { %3633 = vmatmul.mubr.msk.f32.vlgmr.msra.gmra.mrb[20].mxu0 %vm2576_vm5, %v2479_v59 }
0x14c4   :  { %3644 = vmatprep.mubr.msk.f32.mxu0 %vm2576_vm5, %v2478_v53 }
0x14c6   :  { %v2281_v47 = vpop.permute.xlu1 %2280 }
0x14c7   :  { %v2286_v31 = vmul.f32 %v4154_v45, %v2281_v47  ;;  %v2152_v51 = vpop.permute.xlu0 %2151 }
0x14c8   :  { %v2157_v19 = vmul.f32 %v4156_v50, %v2152_v51 }
0x14c9   :  { %2290 = vrot.lane.b32.xlu1 %v2286_v31, %s4189_s14 }
0x14ca   :  { %v2283_v54 = vpop.permute.xlu1 %2282  ;;  %2161 = vrot.lane.b32.xlu0 %v2157_v19, %s4189_s14 }
0x14cb   :  { %v2287_v41 = vmul.f32 %v4158_v37, %v2283_v54  ;;  %v2154_v48 = vpop.permute.xlu0 %2153 }
0x14cc   :  { %v2158_v60 = vmul.f32 %v4160_v57, %v2154_v48 }
0x14cd   :  { %2292 = vrot.lane.b32.xlu1 %v2287_v41, %s4189_s14 }
0x14ce   :  { %2163 = vrot.lane.b32.xlu0 %v2158_v60, %s4189_s14 }
0x153b   :  { %v2291_v3 = vpop.permute.xlu1 %2290 }
0x153c   :  { %v2296_v5 = vadd.f32 %v2291_v3, %v2276_v27  ;;  %v2162_v6 = vpop.permute.xlu0 %2161 }
0x153d   :  { %v4770_v38 = vadd.f32 %v2162_v6, %v2147_v29 }
0x153e   :  { %4161 = vtanh.f32 %v2296_v5 }
0x153f   :  { %v2293_v10 = vpop.permute.xlu1 %2292  ;;  %4163 = vtanh.f32 %v4770_v38 }
0x1540   :  { %v2297_v11 = vadd.f32 %v2293_v10, %v2277_v7  ;;  %v2164_v58 = vpop.permute.xlu0 %2163  ;;  %v3171_v10 = vld [vmem:[%s4890_s4 + $0xd] ss:$0 sm:$0xff] }
0x1541   :  { %v4775_v17 = vadd.f32 %v2164_v58, %v2148_v15  ;;  %v2822_v58 = vld [vmem:[%s4892_s5] sm:$0xff] }
0x1542   :  { %4165 = vtanh.f32 %v2297_v11 }
0x1543   :  { %4167 = vtanh.f32 %v4775_v17 }
0x1548   :  { %v4162_v56 = vpop.eup %4161 }
0x1549   :  { %2302 = vrot.lane.b32.xlu1 %v4162_v56, %s4188_s13  ;;  %v4164_v63 = vpop.eup %4163 }
0x154a   :  { %2173 = vrot.lane.b32.xlu0 %v4164_v63, %s4188_s13  ;;  %v4191_v63 = vmov 0  }
0x154b   :  { %3926 = vset.pattern.permute.xlu1 %v4191_v63  ;;  %3925 = vset.pattern.permute.xlu0 %v4191_v63 }
0x154c   :  { %v4166_v18 = vpop.eup %4165 }
0x154d   :  { %2304 = vrot.lane.b32.xlu1 %v4166_v18, %s4188_s13  ;;  %v4168_v4 = vpop.eup %4167 }
0x154e   :  { %2175 = vrot.lane.b32.xlu0 %v4168_v4, %s4188_s13 }
0x1596   :  { %v3634_v25 = vpop.f32.mrb[20].mxu0 }
0x1597   :  { %v2649_v26 = vpop.f32.mrb[21].mxu0  ;;  %v2655_v12 = vadd.f32 %v3634_v25, %v3166_v9 }
0x1598   :  { %v2650_v30 = vadd.f32 %v3166_v9, %v2649_v26  ;;  %v2840_v26 = vmax.f32 %v4744_v8, 0.0  ;;  %v2834_v8 = vld [vmem:[%s4892_s5 + $0x30] sm:$0xff] }
0x1599   :  { %v2659_v22 = vmax.f32 %v2655_v12, 0.0 }
0x159a   :  { %v2658_v33 = vmax.f32 %v2650_v30, 0.0  ;;  %v2833_v30 = vld [vmem:[%s4892_s5 + $0x28] sm:$0xff] }
0x15bb   :  { %v2303_v49 = vpop.permute.xlu1 %2302 }
0x15bc   :  { %v2308_v55 = vmul.f32 %v4154_v45, %v2303_v49  ;;  %v2174_v2 = vpop.permute.xlu0 %2173 }
0x15bd   :  { %v2179_v61 = vmul.f32 %v4156_v50, %v2174_v2 }
0x15be   :  { %2312 = vrot.lane.b32.xlu0 %v2308_v55, %s4189_s14 }
0x15bf   :  { %v2305_v0 = vpop.permute.xlu1 %2304  ;;  %2320 = vrot.lane.b32.xlu1 %v2179_v61, %s4188_s13 }
0x15c0   :  { %v2309_v21 = vmul.f32 %v4158_v37, %v2305_v0  ;;  %v2176_v23 = vpop.permute.xlu0 %2175 }
0x15c1   :  { %v2180_v35 = vmul.f32 %v4160_v57, %v2176_v23  ;;  %v2830_v23 = vld [vmem:[%s4892_s5 + $0x10] sm:$0xff] }
0x15c2   :  { %2314 = vrot.lane.b32.xlu0 %v2309_v21, %s4189_s14  ;;  %v2841_v21 = vmax.f32 %v4750_v46, 0.0  ;;  %v2832_v46 = vld [vmem:[%s4892_s5 + $0x20] sm:$0xff] }
0x15c3   :  { %2322 = vrot.lane.b32.xlu1 %v2180_v35, %s4188_s13  ;;  %v2831_v35 = vld [vmem:[%s4892_s5 + $0x18] sm:$0xff] }
0x15c4   :  { %v3871_v25 = vpack.c.bf16 %v2831_v35, %v2830_v23 }
0x1630   :  { %v2313_v28 = vpop.permute.xlu0 %2312 }
0x1631   :  { %v2321_v14 = vpop.permute.xlu1 %2320 }
0x1632   :  { %v2326_v16 = vsel %vm252_vm1, %v2313_v28, %v2321_v14  ;;  %v3875_v14 = vpack.c.bf16 %v2833_v30, %v2832_v46 }
0x1633   :  { %3620 = vmatprep.mubr.msk.f32.mxu1 %vm395_vm2, %v2326_v16  ;;  %v4192_v16 = vmov 1  }
0x1634   :  { %v2315_v32 = vpop.permute.xlu0 %2314 }
0x1635   :  { %v2323_v34 = vpop.permute.xlu1 %2322 }
0x1636   :  { %v2327_v36 = vsel %vm252_vm1, %v2315_v32, %v2323_v34  ;;  %v2835_v32 = vld [vmem:[%s4892_s5 + $0x38] sm:$0xff]  ;;  %v2837_v34 = vld [vmem:[%s4892_s5 + $0x48] sm:$0xff] }
0x1637   :  { %3621 = vmatmul.mubr.msk.f32.vlgmr.msra.gmra.mrb[14].mxu1 %vm395_vm2, %v2327_v36  ;;  %v3879_v12 = vpack.c.bf16 %v2835_v32, %v2834_v8 }
0x1638   :  { %3636 = vmatpush3.msra.mxu1 %v2475_v20  ;;  %3637 = vmatprep.mubr.msk.f32.mxu1 %vm58_vm0, %v2658_v33  ;;  %v2836_v33 = vld [vmem:[%s4892_s5 + $0x40] sm:$0xff] }
0x1639   :  { %3647 = vmatprep.subr.mxu1 %v2822_v58  ;;  %v3883_v36 = vpack.c.bf16 %v2837_v34, %v2836_v33 }
0x163b   :  { %3638 = vmatmul.mubr.msk.f32.vlgmr.msra.gmra.mrb[16].mxu1 %vm58_vm0, %v2659_v22 }
0x163c   :  { %3648 = vmatpush3.msra.mxu1 %v2822_v58 }
0x170a   :  { %v3622_v39 = vpop.f32.mrb[14].mxu1 }
0x170b   :  { %v2406_v40 = vadd.f32 %v4690_v13, %v3622_v39  ;;  %v2400_v24 = vpop.f32.mrb[15].mxu1 }
0x170c   :  { %v2401_v42 = vadd.f32 %v4690_v13, %v2400_v24 }
0x170d   :  { %4169 = vtanh.f32 %v2406_v40  ;;  %v3162_v50 = vmul.f32 -1.442695, %v2406_v40 }
0x170e   :  { %4171 = vtanh.f32 %v2401_v42  ;;  %v3639_v43 = vpop.f32.mrb[16].mxu1  ;;  %v3161_v51 = vmul.f32 -1.442695, %v2401_v42  ;;  %v3174_v42 = vld [vmem:[%s4892_s5 + $0x8] ss:$0 sm:$0xff] }
0x170f   :  { %v2732_v44 = vpop.f32.mrb[17].mxu1  ;;  %4173 = vpow2.f32 %v3162_v50  ;;  %v3177_v50 = vld [vmem:[%s4892_s5 + $0x9] ss:$0 sm:$0xff] }
0x1710   :  { %v3867_v45 = vpack.c.bf16 %v3639_v43, %v2732_v44  ;;  %4175 = vpow2.f32 %v3161_v51 }
0x1712   :  { %3868 = vmatprep.subr.bf16.mxu0 %v3867_v45 }
0x1713   :  { %3870 = vmatpush3.bf16.msra.mxu0 %v3867_v45 }
0x1714   :  { %3872 = vmatprep.subr.bf16.mxu0 %v3871_v25 }
0x1716   :  { %3645 = vmatmul.mubr.msk.f32.vlgmr.msra.gmra.mrb[22].mxu0 %vm2576_vm5, %v2479_v59 }
0x1717   :  { %v4170_v47 = vpop.eup %4169  ;;  %3874 = vmatpush3.bf16.msra.mxu0 %v3871_v25 }
0x1718   :  { %v4172_v31 = vpop.eup %4171  ;;  %2429 = vrot.lane.b32.xlu1 %v4170_v47, %s4188_s13  ;;  %3876 = vmatprep.subr.bf16.mxu0 %v3875_v14 }
0x1719   :  { %2427 = vrot.lane.b32.xlu0 %v4172_v31, %s4188_s13  ;;  %v4174_v13 = vpop.eup %4173 }
0x171a   :  { %v4176_v19 = vpop.eup %4175  ;;  %v2416_v37 = vadd.f32 1.0, %v4174_v13 }
0x171b   :  { %v2415_v54 = vadd.f32 1.0, %v4176_v19  ;;  %3878 = vmatpush3.bf16.msra.mxu0 %v3875_v14  ;;  %v3178_v19 = vld [vmem:[%s4892_s5 + $0xa] ss:$0 sm:$0xff] }
0x171c   :  { %4177 = vrcp.f32 %v2416_v37  ;;  %3880 = vmatprep.subr.bf16.mxu0 %v3879_v12 }
0x171d   :  { %4179 = vrcp.f32 %v2415_v54 }
0x171f   :  { %3882 = vmatpush3.bf16.msra.mxu0 %v3879_v12 }
0x1720   :  { %3884 = vmatprep.subr.bf16.mxu0 %v3883_v36 }
0x1723   :  { %3886 = vmatpush3.bf16.msra.mxu0 %v3883_v36 }
0x1726   :  { %v4178_v41 = vpop.eup %4177 }
0x1727   :  { %v4180_v48 = vpop.eup %4179  ;;  %v2424_v1 = vmul.f32 %v4178_v41, %v4775_v17 }
0x1728   :  { %v2423_v3 = vmul.f32 %v4180_v48, %v4770_v38 }
0x178a   :  { %v2430_v57 = vpop.permute.xlu1 %2429 }
0x178b   :  { %v2434_v60 = vmul.f32 %v4178_v41, %v2430_v57  ;;  %v2428_v62 = vpop.permute.xlu0 %2427 }
0x178c   :  { %v2433_v52 = vmul.f32 %v4180_v48, %v2428_v62 }
0x178d   :  { %2439 = vrot.lane.b32.xlu1 %v2434_v60, %s4189_s14 }
0x178e   :  { %2437 = vrot.lane.b32.xlu0 %v2433_v52, %s4189_s14 }
0x17e9   :  { %v3646_v7 = vpop.f32.mrb[22].mxu0 }
0x17ea   :  { %v2817_v11 = vadd.f32 %v3646_v7, %v3171_v10  ;;  %v2811_v15 = vpop.f32.mrb[23].mxu0 }
0x17eb   :  { %v2812_v17 = vadd.f32 %v3171_v10, %v2811_v15 }
0x17ec   :  { %v2821_v53 = vmax.f32 %v2817_v11, 0.0  ;;  %v3180_v11 = vld [vmem:[%s4892_s5 + $0xc] ss:$0 sm:$0xff] }
0x17ed   :  { %v2820_v38 = vmax.f32 %v2812_v17, 0.0 }
0x17ef   :  { %3649 = vmatprep.mubr.msk.f32.mxu1 %vm58_vm0, %v2820_v38 }
0x17f0   :  { %3650 = vmatmul.mubr.msk.f32.vlgmr.msra.gmra.mrb[18].mxu1 %vm58_vm0, %v2821_v53  ;;  %v3183_v53 = vld [vmem:[%s4892_s5 + $0xd] ss:$0 sm:$0xff] }
0x17ff   :  { %v2440_v27 = vpop.permute.xlu1 %2439 }
0x1800   :  { %v2444_v5 = vadd.f32 %v2440_v27, %v2424_v1  ;;  %v2438_v29 = vpop.permute.xlu0 %2437  ;;  %v3179_v1 = vld [vmem:[%s4892_s5 + $0xb] ss:$0 sm:$0xff] }
0x1801   :  { %v2443_v6 = vadd.f32 %v2438_v29, %v2423_v3 }
0x1802   :  { %4181 = vtanh.f32 %v2444_v5 }
0x1803   :  { %4183 = vtanh.f32 %v2443_v6 }
0x180c   :  { %v4182_v59 = vpop.eup %4181 }
0x180d   :  { %v4184_v56 = vpop.eup %4183  ;;  %2451 = vrot.lane.b32.xlu1 %v4182_v59, %s4188_s13 }
0x180e   :  { %2449 = vrot.lane.b32.xlu0 %v4184_v56, %s4188_s13 }
0x187f   :  { %v2452_v18 = vpop.permute.xlu1 %2451 }
0x1880   :  { %v2456_v4 = vmul.f32 %v4178_v41, %v2452_v18  ;;  %v2450_v20 = vpop.permute.xlu0 %2449 }
0x1881   :  { %v2455_v49 = vmul.f32 %v4180_v48, %v2450_v20 }
0x1882   :  { %2461 = vrot.lane.b32.xlu1 %v2456_v4, %s4189_s14 }
0x1883   :  { %2459 = vrot.lane.b32.xlu0 %v2455_v49, %s4189_s14  ;;  %v3184_v49 = vld [vmem:[%s4892_s5 + $0xe] ss:$0 sm:$0xff] }
0x18c3   :  { %v3651_v9 = vpop.f32.mrb[18].mxu1 }
0x18c4   :  { %v2920_v28 = vpop.f32.mrb[19].mxu1 }
0x18f4   :  { %v2462_v55 = vpop.permute.xlu1 %2461 }
0x18f5   :  { %v2468_v2 = vsel %vm252_vm1, %v2462_v55, 0.0  ;;  %v2460_v61 = vpop.permute.xlu0 %2459 }
0x18f6   :  { %v2465_v0 = vsel %vm252_vm1, %v2460_v61, 0.0  ;;  %2469 = vadd.xlane.f32.xlu1 %v2468_v2 }
0x18f7   :  { %2466 = vadd.xlane.f32.xlu0 %v2465_v0 }
0x1907   :  { %2936 = vperm.xlu1 %3926, %v2841_v21  }
0x190b   :  { %3927 = vset.pattern.permute.xlu1 %v4192_v16 }
0x190c   :  { %2948 = vperm.xlu1 %3927, %v2840_v26  }
0x190d   :  { %2931 = vperm.xlu0 %3925, %v2840_v26  }
0x1910   :  { %2952 = vperm.xlu1 %3927, %v2841_v21  }
0x1911   :  { %3928 = vset.pattern.permute.xlu0 %v4192_v16 }
0x1983   :  { %v2470_v22 = vpop.xlane.xlu1 %2469 }
0x1984   :  { %v2473_v39 = vmul.f32 0.03125, %v2470_v22  ;;  %v2467_v40 = vpop.xlane.xlu0 %2466 }
0x1985   :  { %v2472_v24 = vmul.f32 0.03125, %v2467_v40 }
0x1986   :  { %v2839_v43 = vmax.f32 %v2473_v39, 0.0 }
0x1987   :  { %v2838_v44 = vmax.f32 %v2472_v24, 0.0  ;;  %v2937_v45 = vpop.permute.xlu1 %2936 }
0x1988   :  { %v2847_v47 = vmul.f32 %v3174_v42, %v2839_v43  ;;  %v2944_v57 = vmul.f32 %v3177_v50, %v2937_v45 }
0x1989   :  { %v2846_v31 = vmul.f32 %v3174_v42, %v2838_v44 }
0x198a   :  { %v2926_v13 = vadd.f32 %v3651_v9, %v2847_v47 }
0x198b   :  { %v2949_v51 = vpop.permute.xlu1 %2948  ;;  %v2921_v54 = vadd.f32 %v2920_v28, %v2846_v31 }
0x198c   :  { %v2932_v37 = vpop.permute.xlu0 %2931  ;;  %v2959_v48 = vmul.f32 %v3178_v19, %v2949_v51  ;;  %v2946_v52 = vadd.f32 %v2944_v57, %v2926_v13 }
0x198d   :  { %v2943_v41 = vmul.f32 %v3177_v50, %v2932_v37 }
0x198f   :  { %v2945_v60 = vadd.f32 %v2943_v41, %v2921_v54  ;;  %v2953_v62 = vpop.permute.xlu1 %2952 }
0x1990   :  { %v2960_v27 = vmul.f32 %v3178_v19, %v2953_v62 }
0x1991   :  { %v2961_v3 = vadd.f32 %v2959_v48, %v2945_v60 }
0x1992   :  { %v2962_v5 = vadd.f32 %v2960_v27, %v2946_v52 }
0x1993   :  { %v2967_v29 = vadd.f32 %v3179_v1, %v2961_v3 }
0x1994   :  { %v2968_v6 = vadd.f32 %v3179_v1, %v2962_v5 }
0x1995   :  { %v2969_v7 = vmax.f32 %v2967_v29, 0.0 }
0x1996   :  { %v2970_v10 = vmax.f32 %v2968_v6, 0.0 }
0x1997   :  { %3668 = vmatprep.mubr.msk.f32.mxu0 %vm395_vm2, %v2969_v7 }
0x1998   :  { %3669 = vmatmul.mubr.msk.f32.vlgmr.msra.gmra.mrb[24].mxu0 %vm395_vm2, %v2970_v10 }
0x1a6b   :  { %v3670_v15 = vpop.f32.mrb[24].mxu0 }
0x1a6c   :  { %v3053_v58 = vadd.f32 %v3670_v15, %v3180_v11  ;;  %v3047_v17 = vpop.f32.mrb[25].mxu0 }
0x1a6d   :  { %v3048_v38 = vadd.f32 %v3180_v11, %v3047_v17 }
0x1a6e   :  { %v3057_v59 = vmax.f32 %v3053_v58, 0.0 }
0x1a6f   :  { %v3056_v56 = vmax.f32 %v3048_v38, 0.0 }
0x1a70   :  { %v3063_v63 = vmul.f32 %v3183_v53, %v3057_v59 }
0x1a71   :  { %v3062_v18 = vmul.f32 %v3183_v53, %v3056_v56 }
0x1a72   :  { %v3067_v4 = vsel %vm395_vm2, %v3063_v63, 0.0 }
0x1a73   :  { %3068 = vadd.xlane.f32.xlu0 %v3067_v4  ;;  %v3064_v20 = vsel %vm395_vm2, %v3062_v18, 0.0 }
0x1a74   :  { %3065 = vadd.xlane.f32.xlu1 %v3064_v20 }
0x1b00   :  { %v3069_v55 = vpop.xlane.xlu0 %3068 }
0x1b01   :  { %v3075_v2 = vadd.f32 %v3184_v49, %v3069_v55  ;;  %v3066_v61 = vpop.xlane.xlu1 %3065 }
0x1b02   :  { %v3074_v0 = vadd.f32 %v3184_v49, %v3066_v61 }
0x1b03   :  { %3078 = vst.msk [vmem:[%s4893_s6 + $0x8] sm:$0xff] %vm3076_vm6, %v3075_v2 }
0x1b04   :  { %3077 = vst.msk [vmem:[%s4893_s6] sm:$0xff] %vm3076_vm6, %v3074_v0 }

</bundles_post_ra>
